<compile_context>
chip_gen: v5e
topology: v5e:2x2
jax: 0.10.0
libtpu: 0.0.40
codegen_flags: <defaults>
</compile_context>

<pallas_src>
import functools

import jax
import jax.numpy as jnp
import numpy as np
from jax.experimental import pallas as pl
from jax.experimental.pallas import tpu as pltpu

LANE = 128


def _round_up(x, m):
    return (x + m - 1) // m * m


def _padded_vmem_bytes(shape, dtype):
    """Approx VMEM-resident bytes: minor dim pads to 128 lanes, second-minor pads to
    the dtype's sublane tile (8 for f32, 16 for bf16)."""
    item = np.dtype(dtype).itemsize
    sub = {4: 8, 2: 16, 1: 32}.get(item, 8)
    if len(shape) == 0:
        return item
    if len(shape) == 1:
        return _round_up(int(shape[0]), LANE) * item
    lead = 1
    for d in shape[:-2]:
        lead *= int(d)
    return lead * _round_up(int(shape[-2]), sub) * _round_up(int(shape[-1]), LANE) * item


# ----------------------------------------------------------------------------
# Fused forward kernel
# ----------------------------------------------------------------------------
def _fused_forward_kernel(xc1_ref, w1_ref, b1_ref, w2_ref, b2_ref,
                          fw1_ref, fb1_ref, fw2_ref, fb2_ref,
                          out_ref,
                          s1_ref, sp2_ref, xc2_ref, s2_ref, feat_ref):
    f32, bf16 = jnp.float32, jnp.bfloat16

    bb, H2, W1, C1 = s1_ref.shape
    H1, W2 = 2 * H2, W1 // 2
    H3, W3 = H2 // 2, W2 // 2
    K1 = w1_ref.shape[0]

    # ---- conv1 + bias + ReLU: ONE K-stacked im2col matmul (K = 9*Cin).
    # The im2col slab is built once in the wrapper, so the kernel input is a
    # (bb, H*W, 27) bf16 block instead of a (bb,H,W,3) tensor whose 3-wide
    # minor dim would pad ~42x in VMEM. ----
    a1 = jnp.dot(xc1_ref[...].reshape(bb * H1 * W1, K1), w1_ref[...],
                 preferred_element_type=f32)
    y1 = jnp.maximum(a1 + b1_ref[...], 0.0).reshape(bb, H1, W1, C1)

    # ---- maxpool1 (2x2): H-pool on the register value (leading-dim split);
    # W-pool via two stride-2 reads of a small f32 scratch, written directly
    # into the zero-padded conv2 input (no separate pooled tensor stored). ----
    y1 = y1.reshape(bb, H2, 2, W1, C1)
    s1_ref[...] = jnp.maximum(y1[:, :, 0], y1[:, :, 1])

    # Zero only the 1-px border (interior is fully overwritten every step).
    # Done per step -- not under pl.when(pid == 0) -- so it remains correct when
    # the "parallel" grid axis is sharded across v7x's two TensorCores.
    zrow = jnp.zeros((bb, 1, W2 + 2, C1), f32)
    zcol = jnp.zeros((bb, H2 + 2, 1, C1), f32)
    sp2_ref[:, 0:1, :, :] = zrow
    sp2_ref[:, H2 + 1:H2 + 2, :, :] = zrow
    sp2_ref[:, :, 0:1, :] = zcol
    sp2_ref[:, :, W2 + 1:W2 + 2, :] = zcol
    sp2_ref[:, 1:1 + H2, 1:1 + W2, :] = jnp.maximum(
        s1_ref[:, :, pl.ds(0, W2, 2), :], s1_ref[:, :, pl.ds(1, W2, 2), :])

    # ---- conv2: assemble the K-stacked (K = 9*C1) bf16 im2col slab in VMEM via
    # 9 lane-offset stores, then ONE matmul (replaces 9 accumulated matmuls,
    # 8 full-tensor f32 adds and 9 per-tap casts). ----
    for t in range(9):
        kh, kw = divmod(t, 3)
        xc2_ref[:, t * C1:(t + 1) * C1] = (
            sp2_ref[:, kh:kh + H2, kw:kw + W2, :]
            .reshape(bb * H2 * W2, C1).astype(bf16))
    a2 = jnp.dot(xc2_ref[...], w2_ref[...], preferred_element_type=f32)
    y2 = jnp.maximum(a2 + b2_ref[...], 0.0).reshape(bb, H2, W2, C1)

    # ---- maxpool2 (2x2), same pattern ----
    y2 = y2.reshape(bb, H3, 2, W2, C1)
    s2_ref[...] = jnp.maximum(y2[:, :, 0], y2[:, :, 1])
    p2 = jnp.maximum(s2_ref[:, :, pl.ds(0, W3, 2), :],
                     s2_ref[:, :, pl.ds(1, W3, 2), :]).astype(bf16)

    # ---- classifier head: pack features into ONE lane-dense bf16 row (NHWC
    # order matches the row permutation baked into fw1 at prep time), then a
    # single K = H3*W3*C1 matmul + ReLU + output matmul (replaces the 16-matmul
    # fc1 loop; the lane-offset stores are tiny VPU/VST work). ----
    for h in range(H3):
        for w in range(W3):
            j = (h * W3 + w) * C1
            feat_ref[:, j:j + C1] = p2[:, h, w, :]
    hid = jnp.maximum(jnp.dot(feat_ref[...], fw1_ref[...],
                              preferred_element_type=f32) + fb1_ref[...], 0.0)
    logits = jnp.dot(hid.astype(bf16), fw2_ref[...],
                     preferred_element_type=f32) + fb2_ref[...]
    out_ref[0] = logits.astype(out_ref.dtype)


# ----------------------------------------------------------------------------
# pallas_call wrapper
# ----------------------------------------------------------------------------
def _fused_forward(xcol, prep, *, block_b, H, W):
    """xcol: (B, H*W, 9*Cin) bf16 im2col slab.  Returns (B, NP) f32 padded logits."""
    B, HW, K1 = xcol.shape
    w1, b1 = prep["w1"], prep["b1"]
    w2, b2 = prep["w2"], prep["b2"]
    fw1, fb1 = prep["fw1"], prep["fb1"]
    fw2, fb2 = prep["fw2"], prep["fb2"]
    C1 = w1.shape[1]
    NP = fw2.shape[1]
    assert H % 4 == 0 and W % 4 == 0
    H1, W1 = H, W
    H2, W2 = H1 // 2, W1 // 2
    H3, W3 = H2 // 2, W2 // 2
    assert HW == H1 * W1
    assert fw1.shape[0] == H3 * W3 * C1

    bb = block_b
    assert B % bb == 0, "block_b must divide B (wrapper picks a divisor)"
    G = B // bb

    def full_spec(a):
        nd = a.ndim
        return pl.BlockSpec(a.shape, lambda i, _nd=nd: (0,) * _nd)

    weights = (w1, b1, w2, b2, fw1, fb1, fw2, fb2)

    scratch_defs = [
        ((bb, H2, W1, C1), jnp.float32),             # H-pooled conv1 (W-pool source)
        ((bb, H2 + 2, W2 + 2, C1), jnp.float32),     # zero-padded pool1 output
        ((bb * H2 * W2, 9 * C1), jnp.bfloat16),      # conv2 im2col slab (K-stacked)
        ((bb, H3, W2, C1), jnp.float32),             # H-pooled conv2 (W-pool source)
        ((bb, H3 * W3 * C1), jnp.bfloat16),          # flattened lane-dense features
    ]
    scratch = [pltpu.VMEM(s, d) for s, d in scratch_defs]

    # Explicit VMEM budget from padded (lane=128 / sublane 8|16) footprints:
    # pipelined (double-buffered) blocks + single-buffered scratch, 2x headroom,
    # floored at 32 MiB and capped below v7x's 64 MiB physical VMEM.
    pipelined = [((bb, HW, K1), xcol.dtype), ((1, bb, NP), jnp.float32)]
    pipelined += [(a.shape, a.dtype) for a in weights]
    est = 2 * sum(_padded_vmem_bytes(s, d) for s, d in pipelined)
    est += sum(_padded_vmem_bytes(s, d) for s, d in scratch_defs)
    vmem_limit = int(min(max(2 * est, 32 * 1024 * 1024), 64 * 1024 * 1024))

    out = pl.pallas_call(
        _fused_forward_kernel,
        out_shape=jax.ShapeDtypeStruct((G, bb, NP), jnp.float32),
        grid_spec=pltpu.PrefetchScalarGridSpec(
            num_scalar_prefetch=0,
            grid=(G,),
            in_specs=[pl.BlockSpec((bb, HW, K1), lambda i: (i, 0, 0))]
                     + [full_spec(a) for a in weights],
            out_specs=pl.BlockSpec((1, bb, NP), lambda i: (i, 0, 0)),
            scratch_shapes=scratch,
        ),
        compiler_params=pltpu.CompilerParams(
            dimension_semantics=("parallel",),
            vmem_limit_bytes=vmem_limit,
        ),
    )(xcol, *weights)
    return out.reshape(B, NP)


# ----------------------------------------------------------------------------
# One-time parameter preparation (layout transforms done once, not per forward)
# ----------------------------------------------------------------------------
def prepare_params(params):
    c1w, c2w = params["conv1_w"], params["conv2_w"]
    C1 = c1w.shape[0]
    fc1_w, fc2_w = params["fc1_w"], params["fc2_w"]
    hidden = fc1_w.shape[1]
    num_classes = fc2_w.shape[1]
    HP = _round_up(hidden, LANE)
    NP = _round_up(num_classes, LANE)

    feat_dim = fc1_w.shape[0]
    hw = feat_dim // C1
    H3 = int(round(hw ** 0.5))
    W3 = hw // H3
    assert H3 * W3 * C1 == feat_dim

    def conv_rows(w):  # (Cout, Cin, 3, 3) -> (9*Cin, Cout); row = (kh*3+kw)*Cin + cin
        return jnp.transpose(w, (2, 3, 1, 0)).reshape(
            9 * w.shape[1], w.shape[0]).astype(jnp.bfloat16)

    # fc1: PyTorch flattens NCHW (row f = c*H3*W3 + h*W3 + w).  Re-permute rows once
    # to NHWC-flatten order (row = (h*W3 + w)*C1 + c) so the kernel's lane-dense
    # feature row multiplies it with a single K = H3*W3*C1 matmul.
    fw1 = fc1_w.reshape(C1, H3, W3, hidden)
    fw1 = jnp.transpose(fw1, (1, 2, 0, 3)).reshape(H3 * W3 * C1, hidden)
    fw1 = jnp.pad(fw1, ((0, 0), (0, HP - hidden))).astype(jnp.bfloat16)
    fb1 = jnp.pad(params["fc1_b"], (0, HP - hidden)).reshape(1, HP).astype(jnp.float32)

    fw2 = jnp.pad(fc2_w, ((0, HP - hidden), (0, NP - num_classes))).astype(jnp.bfloat16)
    fb2 = jnp.pad(params["fc2_b"], (0, NP - num_classes)).reshape(1, NP).astype(jnp.float32)

    return {
        "w1": conv_rows(c1w),
        "b1": params["conv1_b"].reshape(1, C1).astype(jnp.float32),
        "w2": conv_rows(c2w),
        "b2": params["conv2_b"].reshape(1, C1).astype(jnp.float32),
        "fw1": fw1, "fb1": fb1,
        "fw2": fw2, "fb2": fb2,
    }


def _im2col_3x3(x_nhwc):
    """(B, H, W, Cin) f32 -> (B, H*W, 9*Cin) bf16 im2col slab for a 3x3/pad=1 conv.
    Tap order kh*3+kw, channel-minor -- matches conv_rows()."""
    B, H, W, Cin = x_nhwc.shape
    xp = jnp.pad(x_nhwc, ((0, 0), (1, 1), (1, 1), (0, 0)))
    cols = jnp.concatenate(
        [xp[:, kh:kh + H, kw:kw + W, :] for kh in range(3) for kw in range(3)],
        axis=-1)
    return cols.reshape(B, H * W, 9 * Cin).astype(jnp.bfloat16)


# ----------------------------------------------------------------------------
# FaceClassifier forward
# ----------------------------------------------------------------------------
def face_classifier_forward(x_nchw, prep, *, num_classes):
    """x_nchw: (B, 3, H, W) float32, PyTorch NCHW layout."""
    B, _, H, W = x_nchw.shape
    # Host-facing glue: NCHW -> NHWC, one-time conv1 im2col (bf16 halves input DMA).
    x = jnp.transpose(x_nchw, (0, 2, 3, 1)).astype(jnp.float32)
    xcol = _im2col_3x3(x)
    # Batch block: <=32 rows per step, an exact divisor of B (no ragged-tail failure),
    # and >=2 grid steps whenever B >= 2 so both v7x TensorCores get work.
    target = min(32, max(1, B // 2))
    bb = max(d for d in range(1, target + 1) if B % d == 0)
    logits_padded = _fused_forward(xcol, prep, block_b=bb, H=H, W=W)
    return logits_padded[:, :num_classes]


def init_params(key, num_classes=16, enc_channels=32, feat_dim=512):
    ks = jax.random.split(key, 8)
    hidden = num_classes // 2
    s = 0.05
    return {
        # encoder conv weights in PyTorch (Cout, Cin, kh, kw) layout
        "conv1_w": s * jax.random.normal(ks[0], (enc_channels, 3, 3, 3), jnp.float32),
        "conv1_b": s * jax.random.normal(ks[1], (enc_channels,), jnp.float32),
        "conv2_w": s * jax.random.normal(ks[2], (enc_channels, enc_channels, 3, 3), jnp.float32),
        "conv2_b": s * jax.random.normal(ks[3], (enc_channels,), jnp.float32),
        # classifier (stored already transposed to (in, out) for x @ W)
        "fc1_w": s * jax.random.normal(ks[4], (feat_dim, hidden), jnp.float32),
        "fc1_b": s * jax.random.normal(ks[5], (hidden,), jnp.float32),
        "fc2_w": s * jax.random.normal(ks[6], (hidden, num_classes), jnp.float32),
        "fc2_b": s * jax.random.normal(ks[7], (num_classes,), jnp.float32),
    }


# Pure-JAX reference (same math as the PyTorch module) for a loose sanity check.
def _reference_forward(x_nchw, params):
    x = jnp.transpose(x_nchw, (0, 2, 3, 1))

    def conv(x, w, b):
        B, H, W, Cin = x.shape
        Cout = w.shape[0]
        xp = jnp.pad(x, ((0, 0), (1, 1), (1, 1), (0, 0)))
        patches = jnp.stack(
            [xp[:, kh:kh + H, kw:kw + W, :] for kh in range(3) for kw in range(3)],
            axis=3).reshape(B * H * W, 9 * Cin)
        wm = jnp.transpose(w, (2, 3, 1, 0)).reshape(9 * Cin, Cout)
        return jnp.maximum(patches @ wm + b, 0.0).reshape(B, H, W, Cout)

    def pool(x):
        B, H, W, C = x.shape
        return x.reshape(B, H // 2, 2, W // 2, 2, C).max(axis=(2, 4))

    x = pool(conv(x, params["conv1_w"], params["conv1_b"]))
    x = pool(conv(x, params["conv2_w"], params["conv2_b"]))
    B = x.shape[0]
    feat = jnp.transpose(x, (0, 3, 1, 2)).reshape(B, -1)      # PyTorch NCHW flatten
    h = jnp.maximum(feat @ params["fc1_w"] + params["fc1_b"], 0.0)
    return h @ params["fc2_w"] + params["fc2_b"]


if __name__ == "__main__":
    key = jax.random.PRNGKey(0)
    k_x, k_p = jax.random.split(key)

    B, Cin, Himg, Wimg = 2, 3, 16, 16
    num_classes = 16
    x = jax.random.normal(k_x, (B, Cin, Himg, Wimg), jnp.float32)
    params = init_params(k_p, num_classes=num_classes,
                         enc_channels=32, feat_dim=32 * 4 * 4)
    prep = prepare_params(params)

    fwd = jax.jit(functools.partial(face_classifier_forward, num_classes=num_classes))
    logits = fwd(x, prep)
    jax.block_until_ready(logits)

    assert logits.shape == (B, num_classes), logits.shape
    assert logits.dtype == jnp.float32

    # Loose numerical sanity check vs the pure-JAX reference (bf16 matmul operands
    # with f32 accumulation => small deviation is expected).
    ref = _reference_forward(x, params)
    max_err = float(jnp.max(jnp.abs(logits - ref)))
    assert max_err < 5e-2, f"max abs error vs reference: {max_err}"

    # predict() equivalent (argmax over classes) -- plain JAX glue.
    preds = jnp.argmax(logits, axis=1)
    jax.block_until_ready(preds)

    print("KERNEL_OK")
</pallas_src>

<mosaic_0001>
module attributes {stable_mosaic.version = 11 : i64} {
  func.func @_fused_forward_kernel(%arg0: i32, %arg1: memref<1x256x27xbf16, #tpu.memory_space<vmem>>, %arg2: memref<27x32xbf16, #tpu.memory_space<vmem>>, %arg3: memref<1x32xf32, #tpu.memory_space<vmem>>, %arg4: memref<288x32xbf16, #tpu.memory_space<vmem>>, %arg5: memref<1x32xf32, #tpu.memory_space<vmem>>, %arg6: memref<512x128xbf16, #tpu.memory_space<vmem>>, %arg7: memref<1x128xf32, #tpu.memory_space<vmem>>, %arg8: memref<128x128xbf16, #tpu.memory_space<vmem>>, %arg9: memref<1x128xf32, #tpu.memory_space<vmem>>, %arg10: memref<1x1x128xf32, #tpu.memory_space<vmem>>, %arg11: memref<1x8x16x32xf32, #tpu.memory_space<vmem>>, %arg12: memref<1x10x10x32xf32, #tpu.memory_space<vmem>>, %arg13: memref<64x288xbf16, #tpu.memory_space<vmem>>, %arg14: memref<1x4x8x32xf32, #tpu.memory_space<vmem>>, %arg15: memref<1x512xbf16, #tpu.memory_space<vmem>>) attributes {dimension_semantics = [#tpu.dimension_semantics<parallel>], iteration_bounds = array<i64: 2>, scalar_prefetch = 0 : i64, scratch_operands = 5 : i64, tpu.core_type = #tpu.core_type<tc>, window_params = [{transform_indices = @transform_0, window_bounds = array<i64: 1, 256, 27>}, {pipeline_mode = #tpu.pipeline_mode<synchronous>, transform_indices = @transform_1, window_bounds = array<i64: 27, 32>}, {pipeline_mode = #tpu.pipeline_mode<synchronous>, transform_indices = @transform_2, window_bounds = array<i64: 1, 32>}, {pipeline_mode = #tpu.pipeline_mode<synchronous>, transform_indices = @transform_3, window_bounds = array<i64: 288, 32>}, {pipeline_mode = #tpu.pipeline_mode<synchronous>, transform_indices = @transform_4, window_bounds = array<i64: 1, 32>}, {pipeline_mode = #tpu.pipeline_mode<synchronous>, transform_indices = @transform_5, window_bounds = array<i64: 512, 128>}, {pipeline_mode = #tpu.pipeline_mode<synchronous>, transform_indices = @transform_6, window_bounds = array<i64: 1, 128>}, {pipeline_mode = #tpu.pipeline_mode<synchronous>, transform_indices = @transform_7, window_bounds = array<i64: 128, 128>}, {pipeline_mode = #tpu.pipeline_mode<synchronous>, transform_indices = @transform_8, window_bounds = array<i64: 1, 128>}, {transform_indices = @transform_9, window_bounds = array<i64: 1, 1, 128>}]} {
    %c0 = arith.constant 0 : index
    %c0_0 = arith.constant 0 : index
    %c0_1 = arith.constant 0 : index
    %0 = vector.load %arg1[%c0, %c0_0, %c0_1] : memref<1x256x27xbf16, #tpu.memory_space<vmem>>, vector<1x256x27xbf16>
    %1 = vector.shape_cast %0 : vector<1x256x27xbf16> to vector<256x27xbf16>
    %c0_2 = arith.constant 0 : index
    %c0_3 = arith.constant 0 : index
    %2 = vector.load %arg2[%c0_2, %c0_3] : memref<27x32xbf16, #tpu.memory_space<vmem>>, vector<27x32xbf16>
    %cst = arith.constant dense<0.000000e+00> : vector<256x32xf32>
    %3 = tpu.matmul %1, %2, %cst {dimension_numbers = #tpu.dot_dimension_numbers<[1], [0], [0], [1], [0, 0, 1, 1], [], []>} : vector<256x27xbf16>, vector<27x32xbf16>, vector<256x32xf32> -> vector<256x32xf32>
    %c0_4 = arith.constant 0 : index
    %c0_5 = arith.constant 0 : index
    %4 = vector.load %arg3[%c0_4, %c0_5] : memref<1x32xf32, #tpu.memory_space<vmem>>, vector<1x32xf32>
    %5 = vector.broadcast %4 : vector<1x32xf32> to vector<256x32xf32>
    %6 = arith.addf %3, %5 : vector<256x32xf32>
    %cst_6 = arith.constant 0.000000e+00 : f32
    %7 = vector.broadcast %cst_6 : f32 to vector<256x32xf32>
    %8 = arith.maximumf %6, %7 : vector<256x32xf32>
    %9 = vector.shape_cast %8 : vector<256x32xf32> to vector<1x16x16x32xf32>
    %10 = vector.shape_cast %9 : vector<1x16x16x32xf32> to vector<1x8x2x16x32xf32>
    %11 = vector.extract_strided_slice %10 {offsets = [0, 0, 0, 0, 0], sizes = [1, 8, 1, 16, 32], strides = [1, 1, 1, 1, 1]} : vector<1x8x2x16x32xf32> to vector<1x8x1x16x32xf32>
    %12 = vector.shape_cast %11 : vector<1x8x1x16x32xf32> to vector<1x8x16x32xf32>
    %13 = vector.extract_strided_slice %10 {offsets = [0, 0, 1, 0, 0], sizes = [1, 8, 1, 16, 32], strides = [1, 1, 1, 1, 1]} : vector<1x8x2x16x32xf32> to vector<1x8x1x16x32xf32>
    %14 = vector.shape_cast %13 : vector<1x8x1x16x32xf32> to vector<1x8x16x32xf32>
    %15 = arith.maximumf %12, %14 : vector<1x8x16x32xf32>
    %c0_7 = arith.constant 0 : index
    %c0_8 = arith.constant 0 : index
    %c0_9 = arith.constant 0 : index
    %c0_10 = arith.constant 0 : index
    %16 = vector.load %arg11[%c0_7, %c0_8, %c0_9, %c0_10] : memref<1x8x16x32xf32, #tpu.memory_space<vmem>>, vector<1x8x16x32xf32>
    tpu.vector_store %arg11[%c0_7, %c0_8, %c0_9, %c0_10], %15 {strides = array<i32>} : memref<1x8x16x32xf32, #tpu.memory_space<vmem>>, vector<1x8x16x32xf32>,
    %cst_11 = arith.constant 0.000000e+00 : f32
    %17 = vector.broadcast %cst_11 : f32 to vector<1x1x10x32xf32>
    %cst_12 = arith.constant 0.000000e+00 : f32
    %18 = vector.broadcast %cst_12 : f32 to vector<1x10x1x32xf32>
    %c0_13 = arith.constant 0 : index
    %c0_14 = arith.constant 0 : index
    %c0_15 = arith.constant 0 : index
    %c0_16 = arith.constant 0 : index
    %19 = vector.load %arg12[%c0_13, %c0_14, %c0_15, %c0_16] : memref<1x10x10x32xf32, #tpu.memory_space<vmem>>, vector<1x1x10x32xf32>
    tpu.vector_store %arg12[%c0_13, %c0_14, %c0_15, %c0_16], %17 {strides = array<i32>} : memref<1x10x10x32xf32, #tpu.memory_space<vmem>>, vector<1x1x10x32xf32>,
    %c0_17 = arith.constant 0 : index
    %c9 = arith.constant 9 : index
    %c0_18 = arith.constant 0 : index
    %c0_19 = arith.constant 0 : index
    %20 = vector.load %arg12[%c0_17, %c9, %c0_18, %c0_19] : memref<1x10x10x32xf32, #tpu.memory_space<vmem>>, vector<1x1x10x32xf32>
    tpu.vector_store %arg12[%c0_17, %c9, %c0_18, %c0_19], %17 {strides = array<i32>} : memref<1x10x10x32xf32, #tpu.memory_space<vmem>>, vector<1x1x10x32xf32>,
    %c0_20 = arith.constant 0 : index
    %c0_21 = arith.constant 0 : index
    %c0_22 = arith.constant 0 : index
    %c0_23 = arith.constant 0 : index
    %21 = vector.load %arg12[%c0_20, %c0_21, %c0_22, %c0_23] : memref<1x10x10x32xf32, #tpu.memory_space<vmem>>, vector<1x10x1x32xf32>
    tpu.vector_store %arg12[%c0_20, %c0_21, %c0_22, %c0_23], %18 {strides = array<i32>} : memref<1x10x10x32xf32, #tpu.memory_space<vmem>>, vector<1x10x1x32xf32>,
    %c0_24 = arith.constant 0 : index
    %c0_25 = arith.constant 0 : index
    %c9_26 = arith.constant 9 : index
    %c0_27 = arith.constant 0 : index
    %22 = vector.load %arg12[%c0_24, %c0_25, %c9_26, %c0_27] : memref<1x10x10x32xf32, #tpu.memory_space<vmem>>, vector<1x10x1x32xf32>
    tpu.vector_store %arg12[%c0_24, %c0_25, %c9_26, %c0_27], %18 {strides = array<i32>} : memref<1x10x10x32xf32, #tpu.memory_space<vmem>>, vector<1x10x1x32xf32>,
    %c0_28 = arith.constant 0 : index
    %c0_29 = arith.constant 0 : index
    %c0_30 = arith.constant 0 : index
    %c0_31 = arith.constant 0 : index
    %23 = tpu.strided_load %arg11[%c0_28, %c0_29, %c0_30, %c0_31] {strides = array<i32: 1, 1, 2, 1>} : memref<1x8x16x32xf32, #tpu.memory_space<vmem>>, vector<1x8x8x32xf32>
    %c0_32 = arith.constant 0 : index
    %c0_33 = arith.constant 0 : index
    %c1 = arith.constant 1 : index
    %c0_34 = arith.constant 0 : index
    %24 = tpu.strided_load %arg11[%c0_32, %c0_33, %c1, %c0_34] {strides = array<i32: 1, 1, 2, 1>} : memref<1x8x16x32xf32, #tpu.memory_space<vmem>>, vector<1x8x8x32xf32>
    %25 = arith.maximumf %23, %24 : vector<1x8x8x32xf32>
    %c0_35 = arith.constant 0 : index
    %c1_36 = arith.constant 1 : index
    %c1_37 = arith.constant 1 : index
    %c0_38 = arith.constant 0 : index
    %26 = vector.load %arg12[%c0_35, %c1_36, %c1_37, %c0_38] : memref<1x10x10x32xf32, #tpu.memory_space<vmem>>, vector<1x8x8x32xf32>
    tpu.vector_store %arg12[%c0_35, %c1_36, %c1_37, %c0_38], %25 {strides = array<i32>} : memref<1x10x10x32xf32, #tpu.memory_space<vmem>>, vector<1x8x8x32xf32>,
    %c0_39 = arith.constant 0 : index
    %c0_40 = arith.constant 0 : index
    %c0_41 = arith.constant 0 : index
    %c0_42 = arith.constant 0 : index
    %27 = vector.load %arg12[%c0_39, %c0_40, %c0_41, %c0_42] : memref<1x10x10x32xf32, #tpu.memory_space<vmem>>, vector<1x8x8x32xf32>
    %28 = vector.shape_cast %27 : vector<1x8x8x32xf32> to vector<64x32xf32>
    %29 = arith.truncf %28 : vector<64x32xf32> to vector<64x32xbf16>
    %c0_43 = arith.constant 0 : index
    %c0_44 = arith.constant 0 : index
    %30 = vector.load %arg13[%c0_43, %c0_44] : memref<64x288xbf16, #tpu.memory_space<vmem>>, vector<64x32xbf16>
    tpu.vector_store %arg13[%c0_43, %c0_44], %29 {strides = array<i32>} : memref<64x288xbf16, #tpu.memory_space<vmem>>, vector<64x32xbf16>,
    %c0_45 = arith.constant 0 : index
    %c0_46 = arith.constant 0 : index
    %c1_47 = arith.constant 1 : index
    %c0_48 = arith.constant 0 : index
    %31 = vector.load %arg12[%c0_45, %c0_46, %c1_47, %c0_48] : memref<1x10x10x32xf32, #tpu.memory_space<vmem>>, vector<1x8x8x32xf32>
    %32 = vector.shape_cast %31 : vector<1x8x8x32xf32> to vector<64x32xf32>
    %33 = arith.truncf %32 : vector<64x32xf32> to vector<64x32xbf16>
    %c0_49 = arith.constant 0 : index
    %c32 = arith.constant 32 : index
    %34 = vector.load %arg13[%c0_49, %c32] : memref<64x288xbf16, #tpu.memory_space<vmem>>, vector<64x32xbf16>
    tpu.vector_store %arg13[%c0_49, %c32], %33 {strides = array<i32>} : memref<64x288xbf16, #tpu.memory_space<vmem>>, vector<64x32xbf16>,
    %c0_50 = arith.constant 0 : index
    %c0_51 = arith.constant 0 : index
    %c2 = arith.constant 2 : index
    %c0_52 = arith.constant 0 : index
    %35 = vector.load %arg12[%c0_50, %c0_51, %c2, %c0_52] : memref<1x10x10x32xf32, #tpu.memory_space<vmem>>, vector<1x8x8x32xf32>
    %36 = vector.shape_cast %35 : vector<1x8x8x32xf32> to vector<64x32xf32>
    %37 = arith.truncf %36 : vector<64x32xf32> to vector<64x32xbf16>
    %c0_53 = arith.constant 0 : index
    %c64 = arith.constant 64 : index
    %38 = vector.load %arg13[%c0_53, %c64] : memref<64x288xbf16, #tpu.memory_space<vmem>>, vector<64x32xbf16>
    tpu.vector_store %arg13[%c0_53, %c64], %37 {strides = array<i32>} : memref<64x288xbf16, #tpu.memory_space<vmem>>, vector<64x32xbf16>,
    %c0_54 = arith.constant 0 : index
    %c1_55 = arith.constant 1 : index
    %c0_56 = arith.constant 0 : index
    %c0_57 = arith.constant 0 : index
    %39 = vector.load %arg12[%c0_54, %c1_55, %c0_56, %c0_57] : memref<1x10x10x32xf32, #tpu.memory_space<vmem>>, vector<1x8x8x32xf32>
    %40 = vector.shape_cast %39 : vector<1x8x8x32xf32> to vector<64x32xf32>
    %41 = arith.truncf %40 : vector<64x32xf32> to vector<64x32xbf16>
    %c0_58 = arith.constant 0 : index
    %c96 = arith.constant 96 : index
    %42 = vector.load %arg13[%c0_58, %c96] : memref<64x288xbf16, #tpu.memory_space<vmem>>, vector<64x32xbf16>
    tpu.vector_store %arg13[%c0_58, %c96], %41 {strides = array<i32>} : memref<64x288xbf16, #tpu.memory_space<vmem>>, vector<64x32xbf16>,
    %c0_59 = arith.constant 0 : index
    %c1_60 = arith.constant 1 : index
    %c1_61 = arith.constant 1 : index
    %c0_62 = arith.constant 0 : index
    %43 = vector.load %arg12[%c0_59, %c1_60, %c1_61, %c0_62] : memref<1x10x10x32xf32, #tpu.memory_space<vmem>>, vector<1x8x8x32xf32>
    %44 = vector.shape_cast %43 : vector<1x8x8x32xf32> to vector<64x32xf32>
    %45 = arith.truncf %44 : vector<64x32xf32> to vector<64x32xbf16>
    %c0_63 = arith.constant 0 : index
    %c128 = arith.constant 128 : index
    %46 = vector.load %arg13[%c0_63, %c128] : memref<64x288xbf16, #tpu.memory_space<vmem>>, vector<64x32xbf16>
    tpu.vector_store %arg13[%c0_63, %c128], %45 {strides = array<i32>} : memref<64x288xbf16, #tpu.memory_space<vmem>>, vector<64x32xbf16>,
    %c0_64 = arith.constant 0 : index
    %c1_65 = arith.constant 1 : index
    %c2_66 = arith.constant 2 : index
    %c0_67 = arith.constant 0 : index
    %47 = vector.load %arg12[%c0_64, %c1_65, %c2_66, %c0_67] : memref<1x10x10x32xf32, #tpu.memory_space<vmem>>, vector<1x8x8x32xf32>
    %48 = vector.shape_cast %47 : vector<1x8x8x32xf32> to vector<64x32xf32>
    %49 = arith.truncf %48 : vector<64x32xf32> to vector<64x32xbf16>
    %c0_68 = arith.constant 0 : index
    %c160 = arith.constant 160 : index
    %50 = vector.load %arg13[%c0_68, %c160] : memref<64x288xbf16, #tpu.memory_space<vmem>>, vector<64x32xbf16>
    tpu.vector_store %arg13[%c0_68, %c160], %49 {strides = array<i32>} : memref<64x288xbf16, #tpu.memory_space<vmem>>, vector<64x32xbf16>,
    %c0_69 = arith.constant 0 : index
    %c2_70 = arith.constant 2 : index
    %c0_71 = arith.constant 0 : index
    %c0_72 = arith.constant 0 : index
    %51 = vector.load %arg12[%c0_69, %c2_70, %c0_71, %c0_72] : memref<1x10x10x32xf32, #tpu.memory_space<vmem>>, vector<1x8x8x32xf32>
    %52 = vector.shape_cast %51 : vector<1x8x8x32xf32> to vector<64x32xf32>
    %53 = arith.truncf %52 : vector<64x32xf32> to vector<64x32xbf16>
    %c0_73 = arith.constant 0 : index
    %c192 = arith.constant 192 : index
    %54 = vector.load %arg13[%c0_73, %c192] : memref<64x288xbf16, #tpu.memory_space<vmem>>, vector<64x32xbf16>
    tpu.vector_store %arg13[%c0_73, %c192], %53 {strides = array<i32>} : memref<64x288xbf16, #tpu.memory_space<vmem>>, vector<64x32xbf16>,
    %c0_74 = arith.constant 0 : index
    %c2_75 = arith.constant 2 : index
    %c1_76 = arith.constant 1 : index
    %c0_77 = arith.constant 0 : index
    %55 = vector.load %arg12[%c0_74, %c2_75, %c1_76, %c0_77] : memref<1x10x10x32xf32, #tpu.memory_space<vmem>>, vector<1x8x8x32xf32>
    %56 = vector.shape_cast %55 : vector<1x8x8x32xf32> to vector<64x32xf32>
    %57 = arith.truncf %56 : vector<64x32xf32> to vector<64x32xbf16>
    %c0_78 = arith.constant 0 : index
    %c224 = arith.constant 224 : index
    %58 = vector.load %arg13[%c0_78, %c224] : memref<64x288xbf16, #tpu.memory_space<vmem>>, vector<64x32xbf16>
    tpu.vector_store %arg13[%c0_78, %c224], %57 {strides = array<i32>} : memref<64x288xbf16, #tpu.memory_space<vmem>>, vector<64x32xbf16>,
    %c0_79 = arith.constant 0 : index
    %c2_80 = arith.constant 2 : index
    %c2_81 = arith.constant 2 : index
    %c0_82 = arith.constant 0 : index
    %59 = vector.load %arg12[%c0_79, %c2_80, %c2_81, %c0_82] : memref<1x10x10x32xf32, #tpu.memory_space<vmem>>, vector<1x8x8x32xf32>
    %60 = vector.shape_cast %59 : vector<1x8x8x32xf32> to vector<64x32xf32>
    %61 = arith.truncf %60 : vector<64x32xf32> to vector<64x32xbf16>
    %c0_83 = arith.constant 0 : index
    %c256 = arith.constant 256 : index
    %62 = vector.load %arg13[%c0_83, %c256] : memref<64x288xbf16, #tpu.memory_space<vmem>>, vector<64x32xbf16>
    tpu.vector_store %arg13[%c0_83, %c256], %61 {strides = array<i32>} : memref<64x288xbf16, #tpu.memory_space<vmem>>, vector<64x32xbf16>,
    %c0_84 = arith.constant 0 : index
    %c0_85 = arith.constant 0 : index
    %63 = vector.load %arg13[%c0_84, %c0_85] : memref<64x288xbf16, #tpu.memory_space<vmem>>, vector<64x288xbf16>
    %c0_86 = arith.constant 0 : index
    %c0_87 = arith.constant 0 : index
    %64 = vector.load %arg4[%c0_86, %c0_87] : memref<288x32xbf16, #tpu.memory_space<vmem>>, vector<288x32xbf16>
    %cst_88 = arith.constant dense<0.000000e+00> : vector<64x32xf32>
    %65 = tpu.matmul %63, %64, %cst_88 {dimension_numbers = #tpu.dot_dimension_numbers<[1], [0], [0], [1], [0, 0, 1, 1], [], []>} : vector<64x288xbf16>, vector<288x32xbf16>, vector<64x32xf32> -> vector<64x32xf32>
    %c0_89 = arith.constant 0 : index
    %c0_90 = arith.constant 0 : index
    %66 = vector.load %arg5[%c0_89, %c0_90] : memref<1x32xf32, #tpu.memory_space<vmem>>, vector<1x32xf32>
    %67 = vector.broadcast %66 : vector<1x32xf32> to vector<64x32xf32>
    %68 = arith.addf %65, %67 : vector<64x32xf32>
    %cst_91 = arith.constant 0.000000e+00 : f32
    %69 = vector.broadcast %cst_91 : f32 to vector<64x32xf32>
    %70 = arith.maximumf %68, %69 : vector<64x32xf32>
    %71 = vector.shape_cast %70 : vector<64x32xf32> to vector<1x8x8x32xf32>
    %72 = vector.shape_cast %71 : vector<1x8x8x32xf32> to vector<1x4x2x8x32xf32>
    %73 = vector.extract_strided_slice %72 {offsets = [0, 0, 0, 0, 0], sizes = [1, 4, 1, 8, 32], strides = [1, 1, 1, 1, 1]} : vector<1x4x2x8x32xf32> to vector<1x4x1x8x32xf32>
    %74 = vector.shape_cast %73 : vector<1x4x1x8x32xf32> to vector<1x4x8x32xf32>
    %75 = vector.extract_strided_slice %72 {offsets = [0, 0, 1, 0, 0], sizes = [1, 4, 1, 8, 32], strides = [1, 1, 1, 1, 1]} : vector<1x4x2x8x32xf32> to vector<1x4x1x8x32xf32>
    %76 = vector.shape_cast %75 : vector<1x4x1x8x32xf32> to vector<1x4x8x32xf32>
    %77 = arith.maximumf %74, %76 : vector<1x4x8x32xf32>
    %c0_92 = arith.constant 0 : index
    %c0_93 = arith.constant 0 : index
    %c0_94 = arith.constant 0 : index
    %c0_95 = arith.constant 0 : index
    %78 = vector.load %arg14[%c0_92, %c0_93, %c0_94, %c0_95] : memref<1x4x8x32xf32, #tpu.memory_space<vmem>>, vector<1x4x8x32xf32>
    tpu.vector_store %arg14[%c0_92, %c0_93, %c0_94, %c0_95], %77 {strides = array<i32>} : memref<1x4x8x32xf32, #tpu.memory_space<vmem>>, vector<1x4x8x32xf32>,
    %c0_96 = arith.constant 0 : index
    %c0_97 = arith.constant 0 : index
    %c0_98 = arith.constant 0 : index
    %c0_99 = arith.constant 0 : index
    %79 = tpu.strided_load %arg14[%c0_96, %c0_97, %c0_98, %c0_99] {strides = array<i32: 1, 1, 2, 1>} : memref<1x4x8x32xf32, #tpu.memory_space<vmem>>, vector<1x4x4x32xf32>
    %c0_100 = arith.constant 0 : index
    %c0_101 = arith.constant 0 : index
    %c1_102 = arith.constant 1 : index
    %c0_103 = arith.constant 0 : index
    %80 = tpu.strided_load %arg14[%c0_100, %c0_101, %c1_102, %c0_103] {strides = array<i32: 1, 1, 2, 1>} : memref<1x4x8x32xf32, #tpu.memory_space<vmem>>, vector<1x4x4x32xf32>
    %81 = arith.maximumf %79, %80 : vector<1x4x4x32xf32>
    %82 = arith.truncf %81 : vector<1x4x4x32xf32> to vector<1x4x4x32xbf16>
    %83 = vector.extract_strided_slice %82 {offsets = [0, 0, 0, 0], sizes = [1, 1, 1, 32], strides = [1, 1, 1, 1]} : vector<1x4x4x32xbf16> to vector<1x1x1x32xbf16>
    %84 = vector.shape_cast %83 : vector<1x1x1x32xbf16> to vector<1x32xbf16>
    %c0_104 = arith.constant 0 : index
    %c0_105 = arith.constant 0 : index
    %85 = vector.load %arg15[%c0_104, %c0_105] : memref<1x512xbf16, #tpu.memory_space<vmem>>, vector<1x32xbf16>
    tpu.vector_store %arg15[%c0_104, %c0_105], %84 {strides = array<i32>} : memref<1x512xbf16, #tpu.memory_space<vmem>>, vector<1x32xbf16>,
    %86 = vector.extract_strided_slice %82 {offsets = [0, 0, 1, 0], sizes = [1, 1, 1, 32], strides = [1, 1, 1, 1]} : vector<1x4x4x32xbf16> to vector<1x1x1x32xbf16>
    %87 = vector.shape_cast %86 : vector<1x1x1x32xbf16> to vector<1x32xbf16>
    %c0_106 = arith.constant 0 : index
    %c32_107 = arith.constant 32 : index
    %88 = vector.load %arg15[%c0_106, %c32_107] : memref<1x512xbf16, #tpu.memory_space<vmem>>, vector<1x32xbf16>
    tpu.vector_store %arg15[%c0_106, %c32_107], %87 {strides = array<i32>} : memref<1x512xbf16, #tpu.memory_space<vmem>>, vector<1x32xbf16>,
    %89 = vector.extract_strided_slice %82 {offsets = [0, 0, 2, 0], sizes = [1, 1, 1, 32], strides = [1, 1, 1, 1]} : vector<1x4x4x32xbf16> to vector<1x1x1x32xbf16>
    %90 = vector.shape_cast %89 : vector<1x1x1x32xbf16> to vector<1x32xbf16>
    %c0_108 = arith.constant 0 : index
    %c64_109 = arith.constant 64 : index
    %91 = vector.load %arg15[%c0_108, %c64_109] : memref<1x512xbf16, #tpu.memory_space<vmem>>, vector<1x32xbf16>
    tpu.vector_store %arg15[%c0_108, %c64_109], %90 {strides = array<i32>} : memref<1x512xbf16, #tpu.memory_space<vmem>>, vector<1x32xbf16>,
    %92 = vector.extract_strided_slice %82 {offsets = [0, 0, 3, 0], sizes = [1, 1, 1, 32], strides = [1, 1, 1, 1]} : vector<1x4x4x32xbf16> to vector<1x1x1x32xbf16>
    %93 = vector.shape_cast %92 : vector<1x1x1x32xbf16> to vector<1x32xbf16>
    %c0_110 = arith.constant 0 : index
    %c96_111 = arith.constant 96 : index
    %94 = vector.load %arg15[%c0_110, %c96_111] : memref<1x512xbf16, #tpu.memory_space<vmem>>, vector<1x32xbf16>
    tpu.vector_store %arg15[%c0_110, %c96_111], %93 {strides = array<i32>} : memref<1x512xbf16, #tpu.memory_space<vmem>>, vector<1x32xbf16>,
    %95 = vector.extract_strided_slice %82 {offsets = [0, 1, 0, 0], sizes = [1, 1, 1, 32], strides = [1, 1, 1, 1]} : vector<1x4x4x32xbf16> to vector<1x1x1x32xbf16>
    %96 = vector.shape_cast %95 : vector<1x1x1x32xbf16> to vector<1x32xbf16>
    %c0_112 = arith.constant 0 : index
    %c128_113 = arith.constant 128 : index
    %97 = vector.load %arg15[%c0_112, %c128_113] : memref<1x512xbf16, #tpu.memory_space<vmem>>, vector<1x32xbf16>
    tpu.vector_store %arg15[%c0_112, %c128_113], %96 {strides = array<i32>} : memref<1x512xbf16, #tpu.memory_space<vmem>>, vector<1x32xbf16>,
    %98 = vector.extract_strided_slice %82 {offsets = [0, 1, 1, 0], sizes = [1, 1, 1, 32], strides = [1, 1, 1, 1]} : vector<1x4x4x32xbf16> to vector<1x1x1x32xbf16>
    %99 = vector.shape_cast %98 : vector<1x1x1x32xbf16> to vector<1x32xbf16>
    %c0_114 = arith.constant 0 : index
    %c160_115 = arith.constant 160 : index
    %100 = vector.load %arg15[%c0_114, %c160_115] : memref<1x512xbf16, #tpu.memory_space<vmem>>, vector<1x32xbf16>
    tpu.vector_store %arg15[%c0_114, %c160_115], %99 {strides = array<i32>} : memref<1x512xbf16, #tpu.memory_space<vmem>>, vector<1x32xbf16>,
    %101 = vector.extract_strided_slice %82 {offsets = [0, 1, 2, 0], sizes = [1, 1, 1, 32], strides = [1, 1, 1, 1]} : vector<1x4x4x32xbf16> to vector<1x1x1x32xbf16>
    %102 = vector.shape_cast %101 : vector<1x1x1x32xbf16> to vector<1x32xbf16>
    %c0_116 = arith.constant 0 : index
    %c192_117 = arith.constant 192 : index
    %103 = vector.load %arg15[%c0_116, %c192_117] : memref<1x512xbf16, #tpu.memory_space<vmem>>, vector<1x32xbf16>
    tpu.vector_store %arg15[%c0_116, %c192_117], %102 {strides = array<i32>} : memref<1x512xbf16, #tpu.memory_space<vmem>>, vector<1x32xbf16>,
    %104 = vector.extract_strided_slice %82 {offsets = [0, 1, 3, 0], sizes = [1, 1, 1, 32], strides = [1, 1, 1, 1]} : vector<1x4x4x32xbf16> to vector<1x1x1x32xbf16>
    %105 = vector.shape_cast %104 : vector<1x1x1x32xbf16> to vector<1x32xbf16>
    %c0_118 = arith.constant 0 : index
    %c224_119 = arith.constant 224 : index
    %106 = vector.load %arg15[%c0_118, %c224_119] : memref<1x512xbf16, #tpu.memory_space<vmem>>, vector<1x32xbf16>
    tpu.vector_store %arg15[%c0_118, %c224_119], %105 {strides = array<i32>} : memref<1x512xbf16, #tpu.memory_space<vmem>>, vector<1x32xbf16>,
    %107 = vector.extract_strided_slice %82 {offsets = [0, 2, 0, 0], sizes = [1, 1, 1, 32], strides = [1, 1, 1, 1]} : vector<1x4x4x32xbf16> to vector<1x1x1x32xbf16>
    %108 = vector.shape_cast %107 : vector<1x1x1x32xbf16> to vector<1x32xbf16>
    %c0_120 = arith.constant 0 : index
    %c256_121 = arith.constant 256 : index
    %109 = vector.load %arg15[%c0_120, %c256_121] : memref<1x512xbf16, #tpu.memory_space<vmem>>, vector<1x32xbf16>
    tpu.vector_store %arg15[%c0_120, %c256_121], %108 {strides = array<i32>} : memref<1x512xbf16, #tpu.memory_space<vmem>>, vector<1x32xbf16>,
    %110 = vector.extract_strided_slice %82 {offsets = [0, 2, 1, 0], sizes = [1, 1, 1, 32], strides = [1, 1, 1, 1]} : vector<1x4x4x32xbf16> to vector<1x1x1x32xbf16>
    %111 = vector.shape_cast %110 : vector<1x1x1x32xbf16> to vector<1x32xbf16>
    %c0_122 = arith.constant 0 : index
    %c288 = arith.constant 288 : index
    %112 = vector.load %arg15[%c0_122, %c288] : memref<1x512xbf16, #tpu.memory_space<vmem>>, vector<1x32xbf16>
    tpu.vector_store %arg15[%c0_122, %c288], %111 {strides = array<i32>} : memref<1x512xbf16, #tpu.memory_space<vmem>>, vector<1x32xbf16>,
    %113 = vector.extract_strided_slice %82 {offsets = [0, 2, 2, 0], sizes = [1, 1, 1, 32], strides = [1, 1, 1, 1]} : vector<1x4x4x32xbf16> to vector<1x1x1x32xbf16>
    %114 = vector.shape_cast %113 : vector<1x1x1x32xbf16> to vector<1x32xbf16>
    %c0_123 = arith.constant 0 : index
    %c320 = arith.constant 320 : index
    %115 = vector.load %arg15[%c0_123, %c320] : memref<1x512xbf16, #tpu.memory_space<vmem>>, vector<1x32xbf16>
    tpu.vector_store %arg15[%c0_123, %c320], %114 {strides = array<i32>} : memref<1x512xbf16, #tpu.memory_space<vmem>>, vector<1x32xbf16>,
    %116 = vector.extract_strided_slice %82 {offsets = [0, 2, 3, 0], sizes = [1, 1, 1, 32], strides = [1, 1, 1, 1]} : vector<1x4x4x32xbf16> to vector<1x1x1x32xbf16>
    %117 = vector.shape_cast %116 : vector<1x1x1x32xbf16> to vector<1x32xbf16>
    %c0_124 = arith.constant 0 : index
    %c352 = arith.constant 352 : index
    %118 = vector.load %arg15[%c0_124, %c352] : memref<1x512xbf16, #tpu.memory_space<vmem>>, vector<1x32xbf16>
    tpu.vector_store %arg15[%c0_124, %c352], %117 {strides = array<i32>} : memref<1x512xbf16, #tpu.memory_space<vmem>>, vector<1x32xbf16>,
    %119 = vector.extract_strided_slice %82 {offsets = [0, 3, 0, 0], sizes = [1, 1, 1, 32], strides = [1, 1, 1, 1]} : vector<1x4x4x32xbf16> to vector<1x1x1x32xbf16>
    %120 = vector.shape_cast %119 : vector<1x1x1x32xbf16> to vector<1x32xbf16>
    %c0_125 = arith.constant 0 : index
    %c384 = arith.constant 384 : index
    %121 = vector.load %arg15[%c0_125, %c384] : memref<1x512xbf16, #tpu.memory_space<vmem>>, vector<1x32xbf16>
    tpu.vector_store %arg15[%c0_125, %c384], %120 {strides = array<i32>} : memref<1x512xbf16, #tpu.memory_space<vmem>>, vector<1x32xbf16>,
    %122 = vector.extract_strided_slice %82 {offsets = [0, 3, 1, 0], sizes = [1, 1, 1, 32], strides = [1, 1, 1, 1]} : vector<1x4x4x32xbf16> to vector<1x1x1x32xbf16>
    %123 = vector.shape_cast %122 : vector<1x1x1x32xbf16> to vector<1x32xbf16>
    %c0_126 = arith.constant 0 : index
    %c416 = arith.constant 416 : index
    %124 = vector.load %arg15[%c0_126, %c416] : memref<1x512xbf16, #tpu.memory_space<vmem>>, vector<1x32xbf16>
    tpu.vector_store %arg15[%c0_126, %c416], %123 {strides = array<i32>} : memref<1x512xbf16, #tpu.memory_space<vmem>>, vector<1x32xbf16>,
    %125 = vector.extract_strided_slice %82 {offsets = [0, 3, 2, 0], sizes = [1, 1, 1, 32], strides = [1, 1, 1, 1]} : vector<1x4x4x32xbf16> to vector<1x1x1x32xbf16>
    %126 = vector.shape_cast %125 : vector<1x1x1x32xbf16> to vector<1x32xbf16>
    %c0_127 = arith.constant 0 : index
    %c448 = arith.constant 448 : index
    %127 = vector.load %arg15[%c0_127, %c448] : memref<1x512xbf16, #tpu.memory_space<vmem>>, vector<1x32xbf16>
    tpu.vector_store %arg15[%c0_127, %c448], %126 {strides = array<i32>} : memref<1x512xbf16, #tpu.memory_space<vmem>>, vector<1x32xbf16>,
    %128 = vector.extract_strided_slice %82 {offsets = [0, 3, 3, 0], sizes = [1, 1, 1, 32], strides = [1, 1, 1, 1]} : vector<1x4x4x32xbf16> to vector<1x1x1x32xbf16>
    %129 = vector.shape_cast %128 : vector<1x1x1x32xbf16> to vector<1x32xbf16>
    %c0_128 = arith.constant 0 : index
    %c480 = arith.constant 480 : index
    %130 = vector.load %arg15[%c0_128, %c480] : memref<1x512xbf16, #tpu.memory_space<vmem>>, vector<1x32xbf16>
    tpu.vector_store %arg15[%c0_128, %c480], %129 {strides = array<i32>} : memref<1x512xbf16, #tpu.memory_space<vmem>>, vector<1x32xbf16>,
    %c0_129 = arith.constant 0 : index
    %c0_130 = arith.constant 0 : index
    %131 = vector.load %arg15[%c0_129, %c0_130] : memref<1x512xbf16, #tpu.memory_space<vmem>>, vector<1x512xbf16>
    %c0_131 = arith.constant 0 : index
    %c0_132 = arith.constant 0 : index
    %132 = vector.load %arg6[%c0_131, %c0_132] : memref<512x128xbf16, #tpu.memory_space<vmem>>, vector<512x128xbf16>
    %cst_133 = arith.constant dense<0.000000e+00> : vector<1x128xf32>
    %133 = tpu.matmul %131, %132, %cst_133 {dimension_numbers = #tpu.dot_dimension_numbers<[1], [0], [0], [1], [0, 0, 1, 1], [], []>} : vector<1x512xbf16>, vector<512x128xbf16>, vector<1x128xf32> -> vector<1x128xf32>
    %c0_134 = arith.constant 0 : index
    %c0_135 = arith.constant 0 : index
    %134 = vector.load %arg7[%c0_134, %c0_135] : memref<1x128xf32, #tpu.memory_space<vmem>>, vector<1x128xf32>
    %135 = arith.addf %133, %134 : vector<1x128xf32>
    %cst_136 = arith.constant 0.000000e+00 : f32
    %136 = vector.broadcast %cst_136 : f32 to vector<1x128xf32>
    %137 = arith.maximumf %135, %136 : vector<1x128xf32>
    %138 = arith.truncf %137 : vector<1x128xf32> to vector<1x128xbf16>
    %c0_137 = arith.constant 0 : index
    %c0_138 = arith.constant 0 : index
    %139 = vector.load %arg8[%c0_137, %c0_138] : memref<128x128xbf16, #tpu.memory_space<vmem>>, vector<128x128xbf16>
    %cst_139 = arith.constant dense<0.000000e+00> : vector<1x128xf32>
    %140 = tpu.matmul %138, %139, %cst_139 {dimension_numbers = #tpu.dot_dimension_numbers<[1], [0], [0], [1], [0, 0, 1, 1], [], []>} : vector<1x128xbf16>, vector<128x128xbf16>, vector<1x128xf32> -> vector<1x128xf32>
    %c0_140 = arith.constant 0 : index
    %c0_141 = arith.constant 0 : index
    %141 = vector.load %arg9[%c0_140, %c0_141] : memref<1x128xf32, #tpu.memory_space<vmem>>, vector<1x128xf32>
    %142 = arith.addf %140, %141 : vector<1x128xf32>
    %c0_142 = arith.constant 0 : index
    %c0_143 = arith.constant 0 : index
    %c0_144 = arith.constant 0 : index
    %143 = vector.load %arg10[%c0_142, %c0_143, %c0_144] : memref<1x1x128xf32, #tpu.memory_space<vmem>>, vector<1x1x128xf32>
    %144 = vector.shape_cast %143 : vector<1x1x128xf32> to vector<1x128xf32>
    %145 = vector.shape_cast %142 : vector<1x128xf32> to vector<1x1x128xf32>
    tpu.vector_store %arg10[%c0_142, %c0_143, %c0_144], %145 {strides = array<i32>} : memref<1x1x128xf32, #tpu.memory_space<vmem>>, vector<1x1x128xf32>,
    return
  }
  func.func @transform_0(%arg0: i32) -> (i32, i32, i32) {
    %c0_i32 = arith.constant 0 : i32
    %c0_i32_0 = arith.constant 0 : i32
    %c0_i32_1 = arith.constant 0 : i32
    return %arg0, %c0_i32, %c0_i32_0 : i32, i32, i32
  }
  func.func @transform_1(%arg0: i32) -> (i32, i32) {
    %c0_i32 = arith.constant 0 : i32
    %c0_i32_0 = arith.constant 0 : i32
    %c0_i32_1 = arith.constant 0 : i32
    return %c0_i32, %c0_i32_0 : i32, i32
  }
  func.func @transform_2(%arg0: i32) -> (i32, i32) {
    %c0_i32 = arith.constant 0 : i32
    %c0_i32_0 = arith.constant 0 : i32
    %c0_i32_1 = arith.constant 0 : i32
    return %c0_i32, %c0_i32_0 : i32, i32
  }
  func.func @transform_3(%arg0: i32) -> (i32, i32) {
    %c0_i32 = arith.constant 0 : i32
    %c0_i32_0 = arith.constant 0 : i32
    %c0_i32_1 = arith.constant 0 : i32
    return %c0_i32, %c0_i32_0 : i32, i32
  }
  func.func @transform_4(%arg0: i32) -> (i32, i32) {
    %c0_i32 = arith.constant 0 : i32
    %c0_i32_0 = arith.constant 0 : i32
    %c0_i32_1 = arith.constant 0 : i32
    return %c0_i32, %c0_i32_0 : i32, i32
  }
  func.func @transform_5(%arg0: i32) -> (i32, i32) {
    %c0_i32 = arith.constant 0 : i32
    %c0_i32_0 = arith.constant 0 : i32
    %c0_i32_1 = arith.constant 0 : i32
    return %c0_i32, %c0_i32_0 : i32, i32
  }
  func.func @transform_6(%arg0: i32) -> (i32, i32) {
    %c0_i32 = arith.constant 0 : i32
    %c0_i32_0 = arith.constant 0 : i32
    %c0_i32_1 = arith.constant 0 : i32
    return %c0_i32, %c0_i32_0 : i32, i32
  }
  func.func @transform_7(%arg0: i32) -> (i32, i32) {
    %c0_i32 = arith.constant 0 : i32
    %c0_i32_0 = arith.constant 0 : i32
    %c0_i32_1 = arith.constant 0 : i32
    return %c0_i32, %c0_i32_0 : i32, i32
  }
  func.func @transform_8(%arg0: i32) -> (i32, i32) {
    %c0_i32 = arith.constant 0 : i32
    %c0_i32_0 = arith.constant 0 : i32
    %c0_i32_1 = arith.constant 0 : i32
    return %c0_i32, %c0_i32_0 : i32, i32
  }
  func.func @transform_9(%arg0: i32) -> (i32, i32, i32) {
    %c0_i32 = arith.constant 0 : i32
    %c0_i32_0 = arith.constant 0 : i32
    %c0_i32_1 = arith.constant 0 : i32
    return %arg0, %c0_i32, %c0_i32_0 : i32, i32, i32
  }
}

</mosaic_0001>

<bundles_post_ra>
// kernel: face_classifier_forward.1
= control target key start
LH: loop header
LB: loop body
LE: loop exit
PB: predicated region body
PF: predicated region fallthrough
CT: control target
= control target key end

     0   :  { %14 = vsyncpa [#allocation8], 0  ;;  %s3460_s0 = inlined_call_operand.vmem [shape: bf16[2,256,27], index: 0, kind: input, shape index: {}]   ;;  %s3461_s1 = inlined_call_operand.vmem [shape: bf16[27,32], index: 1, kind: input, shape index: {}]   ;;  %s3462_s2 = inlined_call_operand.vmem [shape: f32[1,32], index: 2, kind: input, shape index: {}]   ;;  %s3463_s3 = inlined_call_operand.vmem [shape: bf16[288,32], index: 3, kind: input, shape index: {}]   ;;  %s3464_s4 = inlined_call_operand.vmem [shape: f32[1,32], index: 4, kind: input, shape index: {}]   ;;  %s3465_s5 = inlined_call_operand.vmem [shape: bf16[512,128], index: 5, kind: input, shape index: {}]   ;;  %s3466_s6 = inlined_call_operand.vmem [shape: f32[1,128], index: 6, kind: input, shape index: {}]   ;;  %s3467_s7 = inlined_call_operand.vmem [shape: bf16[128,128], index: 7, kind: input, shape index: {}]   ;;  %s3468_s8 = inlined_call_operand.vmem [shape: f32[1,128], index: 8, kind: input, shape index: {}]   ;;  %s3469_s9 = inlined_call_operand.hbm [shape: f32[2,1,128], index: 9, kind: output, shape index: {}]  }
   0x1   :  { %16 = vsyncpa [#allocation8 + $0x1], 0  ;;  %s2811_s30 = smov 0   ;;  %s2813_s10 = smov 0  }
   0x2   :  { %s2815_s11 = smov 0   ;;  %s2817_s12 = smov 0  }
   0x3 LB: > { %s2832_s13 = sadd.s32 4294967295, %s2754_s12   ;;  %s2165_s14 = sadd.s32 4294967294, %s2754_s12   ;;  %s2754_s12 = sphi %s2817_s12, %s3483_s12   ;;  %s2750_s11 = sphi %s2815_s11, %s3482_s11   ;;  %s2746_s10 = sphi %s2813_s10, %s3481_s10   ;;  %s2742_s30 = sphi %s2811_s30, %s3480_s30  }
   0x4   : > { %s2836_s15 = sadd.s32 1, %s2754_s12   ;;  %s223_s16 = sadd.s32 1, %s2750_s11 }
   0x5   : > { %s220_s17 = ssub.s32 %s2754_s12, %s2836_s15  ;;  %p233_p0 = scmp.ne.s32.totalorder %s2750_s11, %s2746_s10 }
   0x6   : > { %p221_p1 = scmp.eq.s32.totalorder %s220_s17, 0  ;;  %p234_p2 = scmp.eq.s32.totalorder %s2832_s13, 1 }
   0x7   : > { %p239_p3 = scmp.ne.s32.totalorder %s2746_s10, %s2742_s30  ;;  %p240_p4 = scmp.eq.s32.totalorder %s2165_s14, 1 }
   0x8   : > { %s2847_s18 = scalar_select %p221_p1, %s2750_s11, %s223_s16  }
   0x9   : > { %p2849_p5 = por %p234_p2, %p233_p0  ;;  %p2853_p6 = por %p240_p4, %p239_p3 }
   0xa   : > { %p2168_p7 = scmp.ge.s32.totalorder %s2754_s12, 1  ;;  %p290_p8 = scmp.lt.s32.totalorder %s2754_s12, 3 }
   0xc   : > { %p291_p9 = pnand %p2168_p7, %p290_p8 }
   0xd   : > { %p325_p10 = scmp.lt.s32.totalorder (!%p291_p9), %s2832_s13, 1  ;;  %s2758_s22 = smov (!%p291_p9), 32  }
   0xe   : > { %294 = sbr.rel (%p291_p9) target bundleno = 1110 (0x456), region = 56  ;;  %s2759_s23 = smov (!%p291_p9), 64  }
   0xf   : > { %s2760_s24 = smov (!%p291_p9), 96   ;;  %s2106_s27 = scalar_lea.hbm (!%p291_p9), %s3469_s9, %s2832_s13 }
  0x13   : > { %v2241_v0 = vld [vmem:[%s3461_s1 + $0x8] sm:$0xf]  ;;  %v2571_v1 = vld [vmem:[%s3461_s1 + $0x8] sm:$0x30]  ;;  %vm511_vm0 = vcmask 1044480   ;;  %vm512_vm1 = vcmask 1045504  }
  0x14   : > { %v2242_v2 = vor.u32 %v2571_v1, %v2241_v0  ;;  %v2756_v3 = vmov 65535   ;;  %s326_s25 = scalar_select %p325_p10, %s2832_s13, 1  ;;  %v2570_v7 = vld [vmem:[%s3461_s1] sm:$0xff]  ;;  %vm462_vm2 = vcmask 220160   ;;  %vm655_vm3 = vcmask 261120  }
  0x15   : > { %v513_v4 = vsel %vm511_vm0, 4294967295, %v2756_v3  ;;  %vm673_vm4 = vcmask 254976   ;;  %v2757_v24 = vmov 0.0   ;;  %vm678_vm5 = vcmask 253952   ;;  %v2912_v29 = vld [vmem:[%s3462_s2] ss:$0 sm:$0xff] }
  0x16   : > { %v514_v5 = vsel %vm512_vm1, %v513_v4, 0  ;;  %s2553_s26 = sshll.u32 %s326_s25, 7  ;;  %672 = vst.msk [vmem:[#allocation3] sm:$0xff] %vm655_vm3, %v2757_v24  ;;  %vm763_vm6 = vcmask 257024   ;;  %vm820_vm7 = vcmask 519424   ;;  %vm877_vm8 = vcmask 781824  }
  0x17   : > { %v516_v6 = vand.u32 %v2242_v2, %v514_v5  ;;  %s2873_s16 = scalar_lea.vmem %s3460_s0, %s2553_s26  ;;  %674 = vst.msk [vmem:[#allocation3 + $0x8] sm:$0x3] %vm673_vm4, %v2757_v24  ;;  %vm934_vm9 = vcmask 1044224   ;;  %vm1523_vm10 = vsmask.f32 256  ;;  %vm1530_vm12 = vcmask 1040384  }
  0x18   : > { %v2554_v8 = vld [vmem:[%s2873_s16] sm:$0xff]  ;;  %v2564_v9 = vld [vmem:[%s2873_s16 + $0x50] sm:$0xff]  ;;  %v2555_v10 = vld [vmem:[%s2873_s16 + $0x8] sm:$0xff]  ;;  %677 = vst.msk [vmem:[#allocation3 + $0x98] sm:$0x3] %vm673_vm4, %v2757_v24  ;;  %vm1541_vm13 = vcmask 516352  }
  0x19   : > { %524 = vmatpush.bf16.msra.mxu0 %v516_v6  ;;  %2642 = vmatpush.bf16.msra.mxu2 %v516_v6  ;;  %v2565_v11 = vld [vmem:[%s2873_s16 + $0x58] sm:$0xff]  ;;  %v2556_v12 = vld [vmem:[%s2873_s16 + $0x10] sm:$0xff]  ;;  %v2566_v13 = vld [vmem:[%s2873_s16 + $0x60] sm:$0xff]  ;;  %676 = vst.msk [vmem:[#allocation3 + $0x90] sm:$0xff] %vm655_vm3, %v2757_v24  ;;  %vm1553_vm15 = vcmask 778752   ;;  %vm1568_vm1 = vcmask 1041152  }
  0x1a   : > { %2643 = vmatpush.bf16.msra.mxu3 %v516_v6  ;;  %v2557_v14 = vld [vmem:[%s2873_s16 + $0x18] sm:$0xff]  ;;  %v2567_v15 = vld [vmem:[%s2873_s16 + $0x68] sm:$0xff]  ;;  %v2558_v16 = vld [vmem:[%s2873_s16 + $0x20] sm:$0xff]  ;;  %698 = vst.msk [vmem:[#allocation3 + $0x99] sm:$0x1] %vm678_vm5, %v2757_v24  ;;  %s323_s25 = sand.u32 1, %s2746_s10  }
  0x1b   : > { %v2559_v17 = vld [vmem:[%s2873_s16 + $0x28] sm:$0xff]  ;;  %v2568_v18 = vld [vmem:[%s2873_s16 + $0x70] sm:$0xff]  ;;  %v2569_v19 = vld [vmem:[%s2873_s16 + $0x78] sm:$0xff]  ;;  %679 = vst.msk [vmem:[#allocation3] sm:$0x1] %vm678_vm5, %v2757_v24  ;;  %s2098_s17 = scalar_lea.sflag [#allocation8], %s323_s25 }
  0x1c   : > { %v2560_v20 = vld [vmem:[%s2873_s16 + $0x30] sm:$0xff]  ;;  %v2561_v21 = vld [vmem:[%s2873_s16 + $0x38] sm:$0xff]  ;;  %v2562_v22 = vld [vmem:[%s2873_s16 + $0x40] sm:$0xff]  ;;  %680 = vst.msk [vmem:[#allocation3 + $0x10] sm:$0x1] %vm678_vm5, %v2757_v24 }
  0x1d   : > { %525 = vmatpush.bf16.msra.mxu0 %v2570_v7  ;;  %2644 = vmatpush.bf16.msra.mxu2 %v2570_v7  ;;  %681 = vst.msk [vmem:[#allocation3 + $0x20] sm:$0x1] %vm678_vm5, %v2757_v24  ;;  %v2563_v32 = vld [vmem:[%s2873_s16 + $0x48] sm:$0xff]  ;;  %vm3223_vm11 = vmand %vm678_vm5, %vm1523_vm10  ;;  %s2110_s16 = sshll.u32 %s2106_s27, 4  ;;  %s2111_s16 = int_to_ptr.hbm [resolvable:$true] %s2110_s16 }
  0x1e   : > { %2645 = vmatpush.bf16.msra.mxu3 %v2570_v7  ;;  %v772_v27 = vld [vmem:[#allocation3 + $0x1] sm:$0xff]  ;;  %682 = vst.msk [vmem:[#allocation3 + $0x30] sm:$0x1] %vm678_vm5, %v2757_v24  ;;  %vm3260_vm14 = vmand %vm1541_vm13, %vm1523_vm10 }
  0x1f   : > { %v780_v28 = vpack.c.bf16 %v772_v27, %v772_v27  ;;  %683 = vst.msk [vmem:[#allocation3 + $0x40] sm:$0x1] %vm678_vm5, %v2757_v24  ;;  %vm3299_vm0 = vmand %vm1553_vm15, %vm1523_vm10 }
  0x20   : > { %2243 = vmatmul.msk.bf16.vlgmr.msra.gmra.mxu0 %vm462_vm2, %v2554_v8  ;;  %2253 = vmatmul.msk.bf16.vlgmr.msra.gmra.mxu2 %vm462_vm2, %v2564_v9  ;;  %684 = vst.msk [vmem:[#allocation3 + $0x50] sm:$0x1] %vm678_vm5, %v2757_v24 }
  0x21   : > { %2258 = vmatmul.msk.bf16.vlgmr.msra.gmra.mxu3 %vm462_vm2, %v2569_v19  ;;  %796 = vrot.lane.b32.xlu0 %v780_v28, %s2758_s22  ;;  %685 = vst.msk [vmem:[#allocation3 + $0x60] sm:$0x1] %vm678_vm5, %v2757_v24 }
  0x22   : > { %686 = vst.msk [vmem:[#allocation3 + $0x70] sm:$0x1] %vm678_vm5, %v2757_v24 }
  0x23   : > { %687 = vst.msk [vmem:[#allocation3 + $0x80] sm:$0x1] %vm678_vm5, %v2757_v24 }
  0x24   : > { %689 = vst.msk [vmem:[#allocation3 + $0x9] sm:$0x1] %vm678_vm5, %v2757_v24 }
  0x25   : > { %690 = vst.msk [vmem:[#allocation3 + $0x19] sm:$0x1] %vm678_vm5, %v2757_v24 }
  0x26   : > { %691 = vst.msk [vmem:[#allocation3 + $0x29] sm:$0x1] %vm678_vm5, %v2757_v24 }
  0x27   : > { %692 = vst.msk [vmem:[#allocation3 + $0x39] sm:$0x1] %vm678_vm5, %v2757_v24 }
  0x28   : > { %693 = vst.msk [vmem:[#allocation3 + $0x49] sm:$0x1] %vm678_vm5, %v2757_v24 }
  0x29   : > { %694 = vst.msk [vmem:[#allocation3 + $0x59] sm:$0x1] %vm678_vm5, %v2757_v24 }
  0x2a   : > { %695 = vst.msk [vmem:[#allocation3 + $0x69] sm:$0x1] %vm678_vm5, %v2757_v24 }
  0x2b   : > { %696 = vst.msk [vmem:[#allocation3 + $0x79] sm:$0x1] %vm678_vm5, %v2757_v24  ;;  %v829_v56 = vld [vmem:[#allocation3 + $0x2] sm:$0xff] }
  0x2c   : > { %697 = vst.msk [vmem:[#allocation3 + $0x89] sm:$0x1] %vm678_vm5, %v2757_v24  ;;  %v837_v57 = vpack.c.bf16 %v829_v56, %v829_v56 }
  0x2d   : > { %688 = vst.msk [vmem:[#allocation3 + $0x90] sm:$0x1] %vm678_vm5, %v2757_v24 }
  0x2e   : > { %853 = vrot.lane.b32.xlu2 %v837_v57, %s2759_s23 }
  0x30   : > { %2244 = vmatmul.msk.bf16.gmra.mxu0 %vm462_vm2, %v2555_v10  ;;  %2254 = vmatmul.msk.bf16.gmra.mxu2 %vm462_vm2, %v2565_v11 }
  0x40   : > { %2245 = vmatmul.msk.bf16.gmra.mxu0 %vm462_vm2, %v2556_v12  ;;  %2255 = vmatmul.msk.bf16.gmra.mxu2 %vm462_vm2, %v2566_v13 }
  0x50   : > { %2246 = vmatmul.msk.bf16.gmra.mxu0 %vm462_vm2, %v2557_v14  ;;  %2256 = vmatmul.msk.bf16.gmra.mxu2 %vm462_vm2, %v2567_v15 }
  0x60   : > { %2247 = vmatmul.msk.bf16.gmra.mxu0 %vm462_vm2, %v2558_v16  ;;  %2257 = vmatmul.msk.bf16.gmra.mxu2 %vm462_vm2, %v2568_v18 }
  0x70   : > { %2248 = vmatmul.msk.bf16.gmra.mxu0 %vm462_vm2, %v2559_v17 }
  0x80   : > { %2249 = vmatmul.msk.bf16.gmra.mxu0 %vm462_vm2, %v2560_v20 }
  0x90   : > { %2250 = vmatmul.msk.bf16.gmra.mxu0 %vm462_vm2, %v2561_v21 }
  0x9d   : > { %v527_v23 = vpop.f32.mrf.mxu0 }
  0x9e   : > { %v528_v31 = vadd.f32 %v2912_v29, %v527_v23 }
  0xa0   : > { %2251 = vmatmul.msk.bf16.gmra.mxu0 %vm462_vm2, %v2562_v22  ;;  %v607_v35 = vmax.f32 %v528_v31, 0.0 }
  0xa3   : > { %v577_v25 = vpop.f32.mrf.mxu2 }
  0xa4   : > { %v578_v36 = vadd.f32 %v2912_v29, %v577_v25 }
  0xa5   : > { %v529_v26 = vpop.f32.mrf.mxu0 }
  0xa6   : > { %v530_v40 = vadd.f32 %v2912_v29, %v529_v26  ;;  %v627_v41 = vmax.f32 %v578_v36, 0.0 }
  0xa8   : > { %v608_v46 = vmax.f32 %v530_v40, 0.0 }
  0xab   : > { %v579_v30 = vpop.f32.mrf.mxu2 }
  0xac   : > { %v580_v47 = vadd.f32 %v2912_v29, %v579_v30 }
  0xad   : > { %v532_v33 = vpop.f32.mrf.mxu0 }
  0xae   : > { %v533_v34 = vadd.f32 %v2912_v29, %v532_v33  ;;  %v628_v52 = vmax.f32 %v580_v47, 0.0 }
  0xb0   : > { %v609_v37 = vmax.f32 %v533_v34, 0.0  ;;  %2252 = vmatmul.msk.bf16.gmra.mxu0 %vm462_vm2, %v2563_v32  ;;  %vm3311_vm2 = vmand %vm1568_vm1, %vm1523_vm10 }
  0xb2   : > { %v639_v38 = vmax.f32 %v607_v35, %v609_v37 }
  0xb3   : > { %v582_v39 = vpop.f32.mrf.mxu2 }
  0xb4   : > { %656 = vst.msk [vmem:[#allocation2] sm:$0xff] %vm655_vm3, %v639_v38  ;;  %v583_v42 = vadd.f32 %v2912_v29, %v582_v39 }
  0xb5   : > { %v534_v43 = vpop.f32.mrf.mxu0 }
  0xb6   : > { %v535_v44 = vadd.f32 %v2912_v29, %v534_v43  ;;  %v629_v45 = vmax.f32 %v583_v42, 0.0 }
  0xb8   : > { %v610_v48 = vmax.f32 %v535_v44, 0.0  ;;  %v649_v49 = vmax.f32 %v627_v41, %v629_v45 }
  0xba   : > { %v640_v50 = vmax.f32 %v608_v46, %v610_v48  ;;  %666 = vst.msk [vmem:[#allocation2 + $0x50] sm:$0xff] %vm655_vm3, %v649_v49 }
  0xbb   : > { %v584_v51 = vpop.f32.mrf.mxu2 }
  0xbc   : > { %657 = vst.msk [vmem:[#allocation2 + $0x8] sm:$0xff] %vm655_vm3, %v640_v50  ;;  %v585_v53 = vadd.f32 %v2912_v29, %v584_v51 }
  0xbd   : > { %v537_v54 = vpop.f32.mrf.mxu0 }
  0xbe   : > { %v630_v55 = vmax.f32 %v585_v53, 0.0  ;;  %v538_v4 = vadd.f32 %v2912_v29, %v537_v54 }
  0xc0   : > { %v650_v58 = vmax.f32 %v628_v52, %v630_v55  ;;  %v611_v13 = vmax.f32 %v538_v4, 0.0 }
  0xc2   : > { %667 = vst.msk [vmem:[#allocation2 + $0x58] sm:$0xff] %vm655_vm3, %v650_v58 }
  0xc3   : > { %v699_v59 = vld [vmem:[#allocation2] ss:$2 sm:$0xff]  ;;  %v715_v60 = vld [vmem:[#allocation2 + $0x1] ss:$2 sm:$0xff]  ;;  %v587_v61 = vpop.f32.mrf.mxu2 }
  0xc4   : > { %v730_v62 = vmax.f32 %v699_v59, %v715_v60  ;;  %v588_v14 = vadd.f32 %v2912_v29, %v587_v61  ;;  %v2601_v61 = vld [vmem:[%s3463_s3 + $0x88] sm:$0xff] }
  0xc5   : > { %v539_v63 = vpop.f32.mrf.mxu0  ;;  %1460 = vmatpush.bf16.msrb.mxu3 %v2601_v61 }
  0xc6   : > { %739 = vst.msk [vmem:[#allocation3 + $0x11] sm:$0xff] %vm655_vm3, %v730_v62  ;;  %v540_v17 = vadd.f32 %v2912_v29, %v539_v63  ;;  %v631_v22 = vmax.f32 %v588_v14, 0.0 }
  0xc8   : > { %v612_v31 = vmax.f32 %v540_v17, 0.0 }
  0xc9   : > { %v709_v0 = vld [vmem:[#allocation2 + $0x50] ss:$2 sm:$0xff]  ;;  %v725_v1 = vld [vmem:[#allocation2 + $0x51] ss:$2 sm:$0xff] }
  0xca   : > { %v735_v2 = vmax.f32 %v709_v0, %v725_v1 }
  0xcb   : > { %v589_v3 = vpop.f32.mrf.mxu2 }
  0xcc   : > { %744 = vst.msk [vmem:[#allocation3 + $0x61] sm:$0xff] %vm655_vm3, %v735_v2  ;;  %v590_v32 = vadd.f32 %v2912_v29, %v589_v3 }
  0xcd   : > { %v542_v5 = vpop.f32.mrf.mxu0  ;;  %v967_v6 = vld [vmem:[#allocation3 + $0x12] sm:$0xff] }
  0xce   : > { %v773_v7 = vld [vmem:[#allocation3 + $0x11] sm:$0xff]  ;;  %v543_v9 = vadd.f32 %v2912_v29, %v542_v5  ;;  %v975_v10 = vpack.c.bf16 %v967_v6, %v967_v6  ;;  %v632_v37 = vmax.f32 %v590_v32, 0.0 }
  0xcf   : > { %v886_v8 = vld [vmem:[#allocation3 + $0x10] sm:$0xff]  ;;  %v781_v11 = vpack.c.bf16 %v773_v7, %v773_v7  ;;  %v2600_v7 = vld [vmem:[%s3463_s3 + $0x80] sm:$0xff] }
  0xd0   : > { %v894_v12 = vpack.c.bf16 %v886_v8, %v886_v8  ;;  %v613_v15 = vmax.f32 %v543_v9, 0.0  ;;  %991 = vrot.lane.b32.xlu0 %v975_v10, %s2758_s22  ;;  %1461 = vmatpush.bf16.msrb.mxu3 %v2600_v7  ;;  %v747_v7 = vld [vmem:[#allocation3] sm:$0xff] }
  0xd1   : > { %798 = vrot.lane.b32.xlu1 %v781_v11, %s2758_s22  ;;  %959 = vst.msk [vmem:[#allocation4 + $0x4] sm:$0xf] %vm763_vm6, %v781_v11 }
  0xd2   : > { %765 = vst.msk [vmem:[#allocation4 + $0xc] sm:$0xf] %vm763_vm6, %v894_v12  ;;  %v641_v16 = vmax.f32 %v611_v13, %v613_v15  ;;  %v602_v13 = vpop.f32.mrf.mxu3 }
  0xd3   : > { %v592_v18 = vpop.f32.mrf.mxu2  ;;  %v972_v19 = vld [vmem:[#allocation3 + $0x62] sm:$0xff] }
  0xd4   : > { %v1028_v20 = vld [vmem:[#allocation3 + $0x60] sm:$0xff]  ;;  %658 = vst.msk [vmem:[#allocation2 + $0x10] sm:$0xff] %vm655_vm3, %v641_v16  ;;  %v593_v23 = vadd.f32 %v2912_v29, %v592_v18  ;;  %v2964_v27 = vpack.c.bf16 %v972_v19, %v972_v19  ;;  %v603_v19 = vadd.f32 %v2912_v29, %v602_v13 }
  0xd5   : > { %v1084_v21 = vld [vmem:[#allocation3 + $0x61] sm:$0xff]  ;;  %v2960_v24 = vpack.c.bf16 %v1028_v20, %v1028_v20  ;;  %v544_v26 = vpop.f32.mrf.mxu0 }
  0xd6   : > { %v2962_v25 = vpack.c.bf16 %v1084_v21, %v1084_v21  ;;  %v545_v28 = vadd.f32 %v2912_v29, %v544_v26  ;;  %v633_v30 = vmax.f32 %v593_v23, 0.0  ;;  %1156 = vst.msk [vmem:[#allocation4 + $0x38] sm:$0xf] %vm763_vm6, %v2964_v27 }
  0xd7   : > { %1056 = vrot.lane.b32.xlu2 %v2960_v24, %s2759_s23  ;;  %770 = vst.msk [vmem:[#allocation4 + $0x48] sm:$0xf] %vm763_vm6, %v2960_v24 }
  0xd8   : > { %964 = vst.msk [vmem:[#allocation4 + $0x40] sm:$0xf] %vm763_vm6, %v2962_v25  ;;  %v614_v33 = vmax.f32 %v545_v28, 0.0  ;;  %v651_v34 = vmax.f32 %v631_v22, %v633_v30  ;;  %855 = vrot.lane.b32.xlu0 %v975_v10, %s2759_s23  ;;  %v637_v28 = vmax.f32 %v603_v19, 0.0 }
  0xd9   : > { %910 = vrot.lane.b32.xlu1 %v894_v12, %s2760_s24 }
  0xda   : > { %v642_v35 = vmax.f32 %v612_v31, %v614_v33  ;;  %668 = vst.msk [vmem:[#allocation2 + $0x60] sm:$0xff] %vm655_vm3, %v651_v34  ;;  %v604_v21 = vpop.f32.mrf.mxu3 }
  0xdb   : > { %v594_v36 = vpop.f32.mrf.mxu2  ;;  %v605_v23 = vadd.f32 %v2912_v29, %v604_v21 }
  0xdc   : > { %659 = vst.msk [vmem:[#allocation2 + $0x18] sm:$0xff] %vm655_vm3, %v642_v35  ;;  %v595_v38 = vadd.f32 %v2912_v29, %v594_v36 }
  0xdd   : > { %v547_v39 = vpop.f32.mrf.mxu0  ;;  %v638_v31 = vmax.f32 %v605_v23, 0.0 }
  0xde   : > { %v634_v40 = vmax.f32 %v595_v38, 0.0  ;;  %v548_v49 = vadd.f32 %v2912_v29, %v547_v39 }
  0xe0   : > { %v652_v41 = vmax.f32 %v632_v37, %v634_v40  ;;  %v615_v58 = vmax.f32 %v548_v49, 0.0 }
  0xe1   : > { %1001 = vrot.lane.b32.xlu1 %v2964_v27, %s2758_s22 }
  0xe2   : > { %669 = vst.msk [vmem:[#allocation2 + $0x68] sm:$0xff] %vm655_vm3, %v652_v41 }
  0xe3   : > { %v701_v42 = vld [vmem:[#allocation2 + $0x10] ss:$2 sm:$0xff]  ;;  %v717_v43 = vld [vmem:[#allocation2 + $0x11] ss:$2 sm:$0xff]  ;;  %v597_v12 = vpop.f32.mrf.mxu2 }
  0xe4   : > { %v731_v44 = vmax.f32 %v701_v42, %v717_v43  ;;  %v598_v18 = vadd.f32 %v2912_v29, %v597_v12  ;;  %v854_v12 = vpop.permute.xlu2 %853 }
  0xe5   : > { %v549_v45 = vpop.f32.mrf.mxu0 }
  0xe6   : > { %740 = vst.msk [vmem:[#allocation3 + $0x21] sm:$0xff] %vm655_vm3, %v731_v44  ;;  %v550_v1 = vadd.f32 %v2912_v29, %v549_v45  ;;  %v635_v26 = vmax.f32 %v598_v18, 0.0 }
  0xe8   : > { %v616_v8 = vmax.f32 %v550_v1, 0.0  ;;  %v653_v32 = vmax.f32 %v635_v26, %v637_v28 }
  0xe9   : > { %1112 = vrot.lane.b32.xlu1 %v2962_v25, %s2760_s24  ;;  %v711_v46 = vld [vmem:[#allocation2 + $0x60] ss:$2 sm:$0xff]  ;;  %v727_v47 = vld [vmem:[#allocation2 + $0x61] ss:$2 sm:$0xff] }
  0xea   : > { %v736_v48 = vmax.f32 %v711_v46, %v727_v47  ;;  %670 = vst.msk [vmem:[#allocation2 + $0x70] sm:$0xff] %vm655_vm3, %v653_v32 }
  0xeb   : > { %v599_v20 = vpop.f32.mrf.mxu2 }
  0xec   : > { %745 = vst.msk [vmem:[#allocation3 + $0x71] sm:$0xff] %vm655_vm3, %v736_v48  ;;  %v600_v22 = vadd.f32 %v2912_v29, %v599_v20 }
  0xed   : > { %v552_v50 = vpop.f32.mrf.mxu0  ;;  %v1080_v51 = vld [vmem:[#allocation3 + $0x21] sm:$0xff] }
  0xee   : > { %v968_v52 = vld [vmem:[#allocation3 + $0x22] sm:$0xff]  ;;  %v553_v54 = vadd.f32 %v2912_v29, %v552_v50  ;;  %v1088_v55 = vpack.c.bf16 %v1080_v51, %v1080_v51  ;;  %v636_v30 = vmax.f32 %v600_v22, 0.0 }
  0xef   : > { %v1024_v53 = vld [vmem:[#allocation3 + $0x20] sm:$0xff]  ;;  %v976_v56 = vpack.c.bf16 %v968_v52, %v968_v52 }
  0xf0   : > { %v1032_v57 = vpack.c.bf16 %v1024_v53, %v1024_v53  ;;  %v617_v59 = vmax.f32 %v553_v54, 0.0  ;;  %1104 = vrot.lane.b32.xlu2 %v1088_v55, %s2760_s24  ;;  %960 = vst.msk [vmem:[#allocation4 + $0x10] sm:$0xf] %vm763_vm6, %v1088_v55  ;;  %v654_v33 = vmax.f32 %v636_v30, %v638_v31  ;;  %v1143_v30 = vld [vmem:[#allocation3 + $0x92] sm:$0xff]  ;;  %v2586_v31 = vld [vmem:[%s3463_s3 + $0x10] sm:$0xff] }
  0xf1   : > { %993 = vrot.lane.b32.xlu0 %v976_v56, %s2758_s22  ;;  %1152 = vst.msk [vmem:[#allocation4 + $0x8] sm:$0xf] %vm763_vm6, %v976_v56  ;;  %v1151_v32 = vpack.c.bf16 %v1143_v30, %v1143_v30 }
  0xf2   : > { %1048 = vrot.lane.b32.xlu1 %v1032_v57, %s2759_s23  ;;  %v643_v60 = vmax.f32 %v615_v58, %v617_v59  ;;  %766 = vst.msk [vmem:[#allocation4 + $0x18] sm:$0xf] %vm763_vm6, %v1032_v57  ;;  %v2591_v59 = vld [vmem:[%s3463_s3 + $0x38] sm:$0xff] }
  0xf3   : > { %v1029_v62 = vld [vmem:[#allocation3 + $0x70] sm:$0xff]  ;;  %671 = vst.msk [vmem:[#allocation2 + $0x78] sm:$0xff] %vm655_vm3, %v654_v33  ;;  %1396 = vmatpush.bf16.msra.mxu1 %v2591_v59  ;;  %v2598_v59 = vld [vmem:[%s3463_s3 + $0x70] sm:$0xff] }
  0xf4   : > { %v1085_v63 = vld [vmem:[#allocation3 + $0x71] sm:$0xff]  ;;  %660 = vst.msk [vmem:[#allocation2 + $0x20] sm:$0xff] %vm655_vm3, %v643_v60  ;;  %v3006_v6 = vpack.c.bf16 %v1029_v62, %v1029_v62  ;;  %v2590_v62 = vld [vmem:[%s3463_s3 + $0x30] sm:$0xff] }
  0xf5   : > { %v973_v0 = vld [vmem:[#allocation3 + $0x72] sm:$0xff]  ;;  %v554_v3 = vpop.f32.mrf.mxu0  ;;  %v3003_v4 = vpack.c.bf16 %v1085_v63, %v1085_v63  ;;  %1159 = vst.msk [vmem:[#allocation4 + $0x5c] sm:$0xf] %vm763_vm6, %v1151_v32 }
  0xf6   : > { %v3001_v2 = vpack.c.bf16 %v973_v0, %v973_v0  ;;  %v555_v5 = vadd.f32 %v2912_v29, %v554_v3  ;;  %771 = vst.msk [vmem:[#allocation4 + $0x54] sm:$0xf] %vm763_vm6, %v3006_v6 }
  0xf7   : > { %965 = vst.msk [vmem:[#allocation4 + $0x4c] sm:$0xf] %vm763_vm6, %v3003_v4  ;;  %1397 = vmatpush.bf16.msra.mxu1 %v2590_v62 }
  0xf8   : > { %1157 = vst.msk [vmem:[#allocation4 + $0x44] sm:$0xf] %vm763_vm6, %v3001_v2  ;;  %v618_v9 = vmax.f32 %v555_v5, 0.0  ;;  %912 = vrot.lane.b32.xlu2 %v1032_v57, %s2760_s24  ;;  %v2269_v52 = vld [vmem:[#allocation4 + $0x8] sm:$0xf]  ;;  %v2589_v5 = vld [vmem:[%s3463_s3 + $0x28] sm:$0xff] }
  0xf9   : > { %800 = vrot.lane.b32.xlu0 %v1088_v55, %s2758_s22 }
  0xfa   : > { %v644_v10 = vmax.f32 %v616_v8, %v618_v9  ;;  %v713_v47 = vld [vmem:[#allocation2 + $0x70] ss:$2 sm:$0xff]  ;;  %v729_v48 = vld [vmem:[#allocation2 + $0x71] ss:$2 sm:$0xff]  ;;  %v755_v8 = vpack.c.bf16 %v747_v7, %v747_v7 }
  0xfb   : > { %v737_v50 = vmax.f32 %v713_v47, %v729_v48  ;;  %1398 = vmatpush.bf16.msra.mxu1 %v2589_v5  ;;  %v2596_v5 = vld [vmem:[%s3463_s3 + $0x60] sm:$0xff] }
  0xfc   : > { %661 = vst.msk [vmem:[#allocation2 + $0x28] sm:$0xff] %vm655_vm3, %v644_v10  ;;  %v797_v10 = vpop.permute.xlu0 %796 }
  0xfd   : > { %v557_v11 = vpop.f32.mrf.mxu0  ;;  %746 = vst.msk [vmem:[#allocation3 + $0x81] sm:$0xff] %vm655_vm3, %v737_v50  ;;  %v2599_v50 = vld [vmem:[%s3463_s3 + $0x78] sm:$0xff] }
  0xfe   : > { %v558_v34 = vadd.f32 %v2912_v29, %v557_v11  ;;  %764 = vst.msk [vmem:[#allocation4] sm:$0xf] %vm763_vm6, %v755_v8  ;;  %v2588_v11 = vld [vmem:[%s3463_s3 + $0x20] sm:$0xff]  ;;  %1425 = vmatpush.bf16.msrb.mxu2 %v2599_v50 }
  0xff   : > { %821 = vst.msk [vmem:[#allocation4] sm:$0xf] %vm820_vm7, %v797_v10  ;;  %1399 = vmatpush.bf16.msra.mxu1 %v2588_v11  ;;  %v2595_v10 = vld [vmem:[%s3463_s3 + $0x58] sm:$0xff] }
 0x100   : > { %857 = vrot.lane.b32.xlu2 %v976_v56, %s2759_s23  ;;  %v619_v43 = vmax.f32 %v558_v34, 0.0  ;;  %878 = vst.msk [vmem:[#allocation4] sm:$0xf] %vm877_vm8, %v854_v12  ;;  %v1087_v12 = vld [vmem:[#allocation3 + $0x91] sm:$0xff] }
 0x101   : > { %1058 = vrot.lane.b32.xlu0 %v3006_v6, %s2759_s23 }
 0x102   : > { %1426 = vmatpush.bf16.msrb.mxu2 %v2598_v59 }
 0x103   : > { %v703_v14 = vld [vmem:[#allocation2 + $0x20] ss:$2 sm:$0xff]  ;;  %v719_v15 = vld [vmem:[#allocation2 + $0x21] ss:$2 sm:$0xff] }
 0x104   : > { %v732_v16 = vmax.f32 %v703_v14, %v719_v15  ;;  %v974_v60 = vld [vmem:[#allocation3 + $0x82] sm:$0xff]  ;;  %v2587_v15 = vld [vmem:[%s3463_s3 + $0x18] sm:$0xff] }
 0x105   : > { %v559_v17 = vpop.f32.mrf.mxu0  ;;  %v3051_v61 = vpack.c.bf16 %v974_v60, %v974_v60  ;;  %v1086_v9 = vld [vmem:[#allocation3 + $0x81] sm:$0xff]  ;;  %1400 = vmatpush.bf16.msra.mxu1 %v2587_v15 }
 0x106   : > { %741 = vst.msk [vmem:[#allocation3 + $0x31] sm:$0xff] %vm655_vm3, %v732_v16  ;;  %v560_v46 = vadd.f32 %v2912_v29, %v559_v17  ;;  %v1094_v13 = vpack.c.bf16 %v1086_v9, %v1086_v9  ;;  %v2597_v60 = vld [vmem:[%s3463_s3 + $0x68] sm:$0xff]  ;;  %v2594_v15 = vld [vmem:[%s3463_s3 + $0x50] sm:$0xff] }
 0x107   : > { %1158 = vst.msk [vmem:[#allocation4 + $0x50] sm:$0xf] %vm763_vm6, %v3051_v61  ;;  %1427 = vmatpush.bf16.msrb.mxu2 %v2597_v60 }
 0x108   : > { %1114 = vrot.lane.b32.xlu2 %v3003_v4, %s2760_s24  ;;  %v620_v54 = vmax.f32 %v560_v46, 0.0  ;;  %966 = vst.msk [vmem:[#allocation4 + $0x58] sm:$0xf] %vm763_vm6, %v1094_v13 }
 0x109   : > { %1401 = vmatpush.bf16.msra.mxu1 %v2586_v31 }
 0x10b   : > { %1428 = vmatpush.bf16.msrb.mxu2 %v2596_v5 }
 0x10d   : > { %v562_v35 = vpop.f32.mrf.mxu0  ;;  %v1081_v36 = vld [vmem:[#allocation3 + $0x31] sm:$0xff] }
 0x10e   : > { %v969_v37 = vld [vmem:[#allocation3 + $0x32] sm:$0xff]  ;;  %v563_v39 = vadd.f32 %v2912_v29, %v562_v35  ;;  %v1089_v40 = vpack.c.bf16 %v1081_v36, %v1081_v36  ;;  %v2585_v35 = vld [vmem:[%s3463_s3 + $0x8] sm:$0xff] }
 0x10f   : > { %v1025_v38 = vld [vmem:[#allocation3 + $0x30] sm:$0xff]  ;;  %v977_v41 = vpack.c.bf16 %v969_v37, %v969_v37  ;;  %1402 = vmatpush.bf16.msra.mxu1 %v2585_v35  ;;  %1429 = vmatpush.bf16.msrb.mxu2 %v2595_v10 }
 0x110   : > { %v1033_v42 = vpack.c.bf16 %v1025_v38, %v1025_v38  ;;  %v621_v44 = vmax.f32 %v563_v39, 0.0  ;;  %1106 = vrot.lane.b32.xlu2 %v1089_v40, %s2760_s24  ;;  %961 = vst.msk [vmem:[#allocation4 + $0x1c] sm:$0xf] %vm763_vm6, %v1089_v40 }
 0x111   : > { %995 = vrot.lane.b32.xlu0 %v977_v41, %s2758_s22  ;;  %1153 = vst.msk [vmem:[#allocation4 + $0x14] sm:$0xf] %vm763_vm6, %v977_v41 }
 0x112   : > { %1050 = vrot.lane.b32.xlu1 %v1033_v42, %s2759_s23  ;;  %v645_v45 = vmax.f32 %v619_v43, %v621_v44  ;;  %767 = vst.msk [vmem:[#allocation4 + $0x24] sm:$0xf] %vm763_vm6, %v1033_v42 }
 0x113   : > { %1430 = vmatpush.bf16.msrb.mxu2 %v2594_v15 }
 0x114   : > { %662 = vst.msk [vmem:[#allocation2 + $0x30] sm:$0xff] %vm655_vm3, %v645_v45 }
 0x115   : > { %v564_v49 = vpop.f32.mrf.mxu0 }
 0x116   : > { %v565_v51 = vadd.f32 %v2912_v29, %v564_v49 }
 0x118   : > { %v2574_v53 = vld [vmem:[#allocation4 + $0x10] sm:$0xf0]  ;;  %v622_v55 = vmax.f32 %v565_v51, 0.0 }
 0x119   : > { %859 = vrot.lane.b32.xlu0 %v977_v41, %s2759_s23  ;;  %v2270_v56 = vor.u32 %v2574_v53, %v2269_v52 }
 0x11a   : > { %802 = vrot.lane.b32.xlu1 %v1089_v40, %s2758_s22  ;;  %v646_v57 = vmax.f32 %v620_v54, %v622_v55  ;;  %v2584_v40 = vld [vmem:[%s3463_s3] sm:$0xff] }
 0x11b   : > { %2379 = vmatmul.msk.bf16.vlgmr.msrb.gmra.mxu3 %vm655_vm3, %v2270_v56  ;;  %1403 = vmatpush.bf16.msra.mxu1 %v2584_v40 }
 0x11c   : > { %663 = vst.msk [vmem:[#allocation2 + $0x38] sm:$0xff] %vm655_vm3, %v646_v57 }
 0x11d   : > { %v567_v58 = vpop.f32.mrf.mxu0 }
 0x11e   : > { %v568_v14 = vadd.f32 %v2912_v29, %v567_v58 }
 0x120   : > { %v623_v26 = vmax.f32 %v568_v14, 0.0 }
 0x122   : > { %914 = vrot.lane.b32.xlu1 %v1033_v42, %s2760_s24 }
 0x123   : > { %v705_v63 = vld [vmem:[#allocation2 + $0x30] ss:$2 sm:$0xff]  ;;  %v721_v0 = vld [vmem:[#allocation2 + $0x31] ss:$2 sm:$0xff] }
 0x124   : > { %v733_v1 = vmax.f32 %v705_v63, %v721_v0  ;;  %v1031_v0 = vld [vmem:[#allocation3 + $0x90] sm:$0xff] }
 0x125   : > { %v569_v3 = vpop.f32.mrf.mxu0  ;;  %v1039_v9 = vpack.c.bf16 %v1031_v0, %v1031_v0 }
 0x126   : > { %742 = vst.msk [vmem:[#allocation3 + $0x41] sm:$0xff] %vm655_vm3, %v733_v1  ;;  %v570_v34 = vadd.f32 %v2912_v29, %v569_v3 }
 0x128   : > { %v624_v38 = vmax.f32 %v570_v34, 0.0 }
 0x12d   : > { %v572_v16 = vpop.f32.mrf.mxu0  ;;  %v1026_v17 = vld [vmem:[#allocation3 + $0x40] sm:$0xff] }
 0x12e   : > { %v776_v18 = vld [vmem:[#allocation3 + $0x41] sm:$0xff]  ;;  %v573_v20 = vadd.f32 %v2912_v29, %v572_v16  ;;  %v1034_v21 = vpack.c.bf16 %v1026_v17, %v1026_v17  ;;  %v1095_v16 = vpack.c.bf16 %v1087_v12, %v1087_v12  ;;  %v2293_v17 = vld [vmem:[#allocation4 + $0x38] sm:$0xf] }
 0x12f   : > { %v970_v19 = vld [vmem:[#allocation3 + $0x42] sm:$0xff]  ;;  %v784_v22 = vpack.c.bf16 %v776_v18, %v776_v18 }
 0x130   : > { %v978_v23 = vpack.c.bf16 %v970_v19, %v970_v19  ;;  %v625_v28 = vmax.f32 %v573_v20, 0.0  ;;  %1052 = vrot.lane.b32.xlu2 %v1034_v21, %s2759_s23  ;;  %768 = vst.msk [vmem:[#allocation4 + $0x30] sm:$0xf] %vm763_vm6, %v1034_v21  ;;  %v2580_v18 = vld [vmem:[#allocation4 + $0x40] sm:$0xf0] }
 0x131   : > { %804 = vrot.lane.b32.xlu0 %v784_v22, %s2758_s22  ;;  %962 = vst.msk [vmem:[#allocation4 + $0x28] sm:$0xf] %vm763_vm6, %v784_v22  ;;  %v3098_v42 = vpop.permute.xlu2 %1056  ;;  %v2294_v19 = vor.u32 %v2580_v18, %v2293_v17  ;;  %v3216_v18 = vld [vmem:[%s3464_s4] ss:$0 sm:$0xff] }
 0x132   : > { %1154 = vst.msk [vmem:[#allocation4 + $0x20] sm:$0xf] %vm763_vm6, %v978_v23  ;;  %997 = vrot.lane.b32.xlu1 %v978_v23, %s2758_s22  ;;  %v647_v33 = vmax.f32 %v623_v26, %v625_v28  ;;  %v2305_v26 = vld [vmem:[#allocation4 + $0x50] sm:$0xf]  ;;  %v2583_v28 = vld [vmem:[#allocation4 + $0x58] sm:$0xf0] }
 0x133   : > { %v2306_v30 = vor.u32 %v2583_v28, %v2305_v26 }
 0x134   : > { %664 = vst.msk [vmem:[#allocation2 + $0x40] sm:$0xff] %vm655_vm3, %v647_v33 }
 0x135   : > { %v574_v36 = vpop.f32.mrf.mxu0 }
 0x136   : > { %v575_v37 = vadd.f32 %v2912_v29, %v574_v36 }
 0x138   : > { %v626_v39 = vmax.f32 %v575_v37, 0.0  ;;  %916 = vrot.lane.b32.xlu2 %v1034_v21, %s2760_s24 }
 0x13a   : > { %1108 = vrot.lane.b32.xlu1 %v784_v22, %s2760_s24  ;;  %v648_v41 = vmax.f32 %v624_v38, %v626_v39  ;;  %v2592_v22 = vld [vmem:[%s3463_s3 + $0x40] sm:$0xff] }
 0x13c   : > { %665 = vst.msk [vmem:[#allocation2 + $0x48] sm:$0xff] %vm655_vm3, %v648_v41 }
 0x140   : > { %861 = vrot.lane.b32.xlu2 %v978_v23, %s2759_s23 }
 0x142   : > { %1005 = vrot.lane.b32.xlu1 %v3051_v61, %s2758_s22  ;;  %v992_v29 = vpop.permute.xlu0 %991  ;;  %v2281_v61 = vld [vmem:[#allocation4 + $0x20] sm:$0xf] }
 0x143   : > { %v799_v43 = vpop.permute.xlu1 %798  ;;  %v707_v44 = vld [vmem:[#allocation2 + $0x40] ss:$2 sm:$0xff]  ;;  %v723_v45 = vld [vmem:[#allocation2 + $0x41] ss:$2 sm:$0xff]  ;;  %1015 = vst.msk [vmem:[#allocation4 + $0x4] sm:$0xf] %vm820_vm7, %v992_v29 }
 0x144   : > { %v734_v46 = vmax.f32 %v707_v44, %v723_v45  ;;  %822 = vst.msk [vmem:[#allocation4 + $0xc] sm:$0xf] %vm820_vm7, %v799_v43 }
 0x146   : > { %743 = vst.msk [vmem:[#allocation3 + $0x51] sm:$0xff] %vm655_vm3, %v734_v46 }
 0x14a   : > { %1116 = vrot.lane.b32.xlu1 %v1094_v13, %s2760_s24  ;;  %v1105_v47 = vpop.permute.xlu2 %1104  ;;  %v856_v48 = vpop.permute.xlu0 %855 }
 0x14b   : > { %879 = vst.msk [vmem:[#allocation4 + $0xc] sm:$0xf] %vm877_vm8, %v856_v48  ;;  %v911_v49 = vpop.permute.xlu1 %910 }
 0x14c   : > { %935 = vst.msk [vmem:[#allocation4] sm:$0xf] %vm934_vm9, %v911_v49 }
 0x14d   : > { %v1083_v51 = vld [vmem:[#allocation3 + $0x51] sm:$0xff] }
 0x14e   : > { %v1027_v52 = vld [vmem:[#allocation3 + $0x50] sm:$0xff]  ;;  %v1091_v54 = vpack.c.bf16 %v1083_v51, %v1083_v51 }
 0x14f   : > { %v1139_v53 = vld [vmem:[#allocation3 + $0x52] sm:$0xff]  ;;  %v1035_v55 = vpack.c.bf16 %v1027_v52, %v1027_v52 }
 0x150   : > { %v3111_v56 = vpack.c.bf16 %v1139_v53, %v1139_v53  ;;  %1110 = vrot.lane.b32.xlu2 %v1091_v54, %s2760_s24  ;;  %963 = vst.msk [vmem:[#allocation4 + $0x34] sm:$0xf] %vm763_vm6, %v1091_v54 }
 0x151   : > { %1054 = vrot.lane.b32.xlu0 %v1035_v55, %s2759_s23  ;;  %769 = vst.msk [vmem:[#allocation4 + $0x3c] sm:$0xf] %vm763_vm6, %v1035_v55 }
 0x152   : > { %1155 = vst.msk [vmem:[#allocation4 + $0x2c] sm:$0xf] %vm763_vm6, %v3111_v56  ;;  %806 = vrot.lane.b32.xlu1 %v1091_v54, %s2758_s22  ;;  %v913_v57 = vpop.permute.xlu2 %912 }
 0x153   : > { %936 = vst.msk [vmem:[#allocation4 + $0xc] sm:$0xf] %vm934_vm9, %v913_v57  ;;  %v1002_v58 = vpop.permute.xlu1 %1001  ;;  %v2261_v1 = vld [vmem:[#allocation4] sm:$0xf] }
 0x154   : > { %1020 = vst.msk [vmem:[#allocation4 + $0x40] sm:$0xf] %vm820_vm7, %v1002_v58 }
 0x158   : > { %920 = vrot.lane.b32.xlu2 %v2960_v24, %s2760_s24  ;;  %v1030_v24 = vld [vmem:[#allocation3 + $0x80] sm:$0xff] }
 0x159   : > { %v2577_v62 = vld [vmem:[#allocation4 + $0x28] sm:$0xf0]  ;;  %1003 = vrot.lane.b32.xlu0 %v3001_v2, %s2758_s22  ;;  %v1038_v11 = vpack.c.bf16 %v1030_v24, %v1030_v24 }
 0x15a   : > { %v2282_v63 = vor.u32 %v2577_v62, %v2281_v61  ;;  %918 = vrot.lane.b32.xlu1 %v1035_v55, %s2760_s24  ;;  %v2573_v3 = vld [vmem:[#allocation4 + $0x8] sm:$0xf0]  ;;  %v858_v20 = vpop.permute.xlu2 %857 }
 0x15b   : > { %v3137_v7 = vpop.permute.xlu1 %1112  ;;  %v2262_v8 = vor.u32 %v2573_v3, %v2261_v1 }
 0x15c   : > { %2380 = vmatmul.msk.bf16.gmra.mxu3 %vm655_vm3, %v2282_v63 }
 0x15d   : > { %1404 = vmatmul.bf16.vlgmr.msra.gmra.mxu1 %v2262_v8 }
 0x160   : > { %1060 = vrot.lane.b32.xlu2 %v1038_v11, %s2759_s23 }
 0x161   : > { %1062 = vrot.lane.b32.xlu0 %v1039_v9, %s2759_s23 }
 0x162   : > { %810 = vrot.lane.b32.xlu1 %v3003_v4, %s2758_s22  ;;  %v2593_v4 = vld [vmem:[%s3463_s3 + $0x48] sm:$0xff]  ;;  %v1115_v23 = vpop.permute.xlu2 %1114 }
 0x163   : > { %v994_v13 = vpop.permute.xlu0 %993  ;;  %1431 = vmatpush.bf16.msrb.mxu2 %v2593_v4 }
 0x164   : > { %1016 = vst.msk [vmem:[#allocation4 + $0x10] sm:$0xf] %vm820_vm7, %v994_v13  ;;  %v1049_v14 = vpop.permute.xlu1 %1048 }
 0x165   : > { %1072 = vst.msk [vmem:[#allocation4 + $0x4] sm:$0xf] %vm877_vm8, %v1049_v14 }
 0x166   : > { %1128 = vst.msk [vmem:[#allocation4 + $0x4] sm:$0xf] %vm934_vm9, %v1105_v47 }
 0x167   : > { %1432 = vmatpush.bf16.msrb.mxu2 %v2592_v22 }
 0x168   : > { %1118 = vrot.lane.b32.xlu2 %v1095_v16, %s2760_s24 }
 0x169   : > { %999 = vrot.lane.b32.xlu0 %v3111_v56, %s2758_s22 }
 0x16a   : > { %922 = vrot.lane.b32.xlu1 %v3006_v6, %s2760_s24 }
 0x16b   : > { %v801_v21 = vpop.permute.xlu0 %800 }
 0x16c   : > { %2381 = vmatmul.msk.bf16.gmra.mxu3 %vm655_vm3, %v2294_v19  ;;  %823 = vst.msk [vmem:[#allocation4 + $0x18] sm:$0xf] %vm820_vm7, %v801_v21 }
 0x16d   : > { %880 = vst.msk [vmem:[#allocation4 + $0x18] sm:$0xf] %vm877_vm8, %v858_v20  ;;  %v2572_v35 = vld [vmem:[#allocation4 + $0x4] sm:$0xf] }
 0x170   : > { %865 = vrot.lane.b32.xlu2 %v2964_v27, %s2759_s23  ;;  %v1107_v27 = vpop.permute.xlu2 %1106 }
 0x171   : > { %863 = vrot.lane.b32.xlu0 %v3111_v56, %s2759_s23 }
 0x173   : > { %v1059_v6 = vpop.permute.xlu0 %1058 }
 0x174   : > { %1077 = vst.msk [vmem:[#allocation4 + $0x40] sm:$0xf] %vm877_vm8, %v1059_v6 }
 0x175   : > { %1133 = vst.msk [vmem:[#allocation4 + $0x40] sm:$0xf] %vm934_vm9, %v1115_v23 }
 0x178   : > { %924 = vrot.lane.b32.xlu2 %v1038_v11, %s2760_s24 }
 0x179   : > { %808 = vrot.lane.b32.xlu0 %v2962_v25, %s2758_s22 }
 0x17c   : > { %2382 = vmatmul.msk.bf16.gmra.mxu3 %vm655_vm3, %v2306_v30  ;;  %v2287_v0 = vld [vmem:[#allocation4 + $0x3c] sm:$0xf0] }
 0x181   : > { %867 = vrot.lane.b32.xlu0 %v3001_v2, %s2759_s23 }
 0x183   : > { %v996_v31 = vpop.permute.xlu0 %995 }
 0x184   : > { %1017 = vst.msk [vmem:[#allocation4 + $0x1c] sm:$0xf] %vm820_vm7, %v996_v31  ;;  %v1051_v32 = vpop.permute.xlu1 %1050 }
 0x185   : > { %1073 = vst.msk [vmem:[#allocation4 + $0x10] sm:$0xf] %vm877_vm8, %v1051_v32 }
 0x186   : > { %1129 = vst.msk [vmem:[#allocation4 + $0x10] sm:$0xf] %vm934_vm9, %v1107_v27 }
 0x18a   : > { %v1053_v33 = vpop.permute.xlu2 %1052 }
 0x18b   : > { %v860_v34 = vpop.permute.xlu0 %859  ;;  %1074 = vst.msk [vmem:[#allocation4 + $0x1c] sm:$0xf] %vm877_vm8, %v1053_v33 }
 0x18c   : > { %v803_v25 = vpop.permute.xlu1 %802 }
 0x18d   : > { %824 = vst.msk [vmem:[#allocation4 + $0x24] sm:$0xf] %vm820_vm7, %v803_v25  ;;  %v2263_v36 = vld [vmem:[#allocation4 + $0xc] sm:$0xf0] }
 0x18e   : > { %881 = vst.msk [vmem:[#allocation4 + $0x24] sm:$0xf] %vm877_vm8, %v860_v34  ;;  %v2266_v2 = vor.u32 %v2572_v35, %v2263_v36 }
 0x190   : > { %1433 = vmatmul.bf16.vlgmr.msrb.gmra.mxu2 %v2266_v2  ;;  %v1525_v2 = vld [vmem:[#allocation6] sm:$0x1] }
 0x192   : > { %v917_v37 = vpop.permute.xlu2 %916 }
 0x193   : > { %938 = vst.msk [vmem:[#allocation4 + $0x24] sm:$0xf] %vm934_vm9, %v917_v37 }
 0x194   : > { %v915_v38 = vpop.permute.xlu1 %914 }
 0x195   : > { %937 = vst.msk [vmem:[#allocation4 + $0x18] sm:$0xf] %vm934_vm9, %v915_v38 }
 0x19a   : > { %v2576_v39 = vld [vmem:[#allocation4 + $0x20] sm:$0xf0]  ;;  %v862_v43 = vpop.permute.xlu2 %861 }
 0x19c   : > { %v2273_v40 = vld [vmem:[#allocation4 + $0x18] sm:$0xf] }
 0x19d   : > { %v2274_v41 = vor.u32 %v2576_v39, %v2273_v40 }
 0x19e   : > { %v1463_v4 = vpop.f32.mrf.mxu3 }
 0x19f   : > { %1409 = vmatmul.bf16.gmra.mxu1 %v2274_v41 }
 0x1a3   : > { %v805_v29 = vpop.permute.xlu0 %804 }
 0x1a4   : > { %825 = vst.msk [vmem:[#allocation4 + $0x30] sm:$0xf] %vm820_vm7, %v805_v29  ;;  %v998_v44 = vpop.permute.xlu1 %997 }
 0x1a5   : > { %882 = vst.msk [vmem:[#allocation4 + $0x30] sm:$0xf] %vm877_vm8, %v862_v43 }
 0x1a6   : > { %1018 = vst.msk [vmem:[#allocation4 + $0x28] sm:$0xf] %vm820_vm7, %v998_v44  ;;  %v1465_v30 = vpop.f32.mrf.mxu3 }
 0x1aa   : > { %v1111_v47 = vpop.permute.xlu2 %1110 }
 0x1ac   : > { %v1109_v45 = vpop.permute.xlu1 %1108 }
 0x1ad   : > { %1130 = vst.msk [vmem:[#allocation4 + $0x1c] sm:$0xf] %vm934_vm9, %v1109_v45 }
 0x1b2   : > { %v921_v49 = vpop.permute.xlu2 %920 }
 0x1b4   : > { %v1006_v46 = vpop.permute.xlu1 %1005  ;;  %v2575_v55 = vld [vmem:[#allocation4 + $0x1c] sm:$0xf] }
 0x1b5   : > { %1022 = vst.msk [vmem:[#allocation4 + $0x58] sm:$0xf] %vm820_vm7, %v1006_v46 }
 0x1ba   : > { %v1061_v52 = vpop.permute.xlu2 %1060 }
 0x1bc   : > { %v1117_v48 = vpop.permute.xlu1 %1116 }
 0x1c2   : > { %v1119_v59 = vpop.permute.xlu2 %1118 }
 0x1c3   : > { %v1055_v50 = vpop.permute.xlu0 %1054 }
 0x1c4   : > { %1075 = vst.msk [vmem:[#allocation4 + $0x28] sm:$0xf] %vm877_vm8, %v1055_v50  ;;  %v807_v51 = vpop.permute.xlu1 %806 }
 0x1c5   : > { %1131 = vst.msk [vmem:[#allocation4 + $0x28] sm:$0xf] %vm934_vm9, %v1111_v47 }
 0x1c6   : > { %826 = vst.msk [vmem:[#allocation4 + $0x3c] sm:$0xf] %vm820_vm7, %v807_v51 }
 0x1ca   : > { %v866_v3 = vpop.permute.xlu2 %865 }
 0x1cb   : > { %v1004_v53 = vpop.permute.xlu0 %1003 }
 0x1cc   : > { %1021 = vst.msk [vmem:[#allocation4 + $0x4c] sm:$0xf] %vm820_vm7, %v1004_v53  ;;  %v919_v54 = vpop.permute.xlu1 %918  ;;  %v2275_v56 = vld [vmem:[#allocation4 + $0x24] sm:$0xf0] }
 0x1cd   : > { %1078 = vst.msk [vmem:[#allocation4 + $0x4c] sm:$0xf] %vm877_vm8, %v1061_v52  ;;  %v2278_v57 = vor.u32 %v2575_v55, %v2275_v56 }
 0x1ce   : > { %1134 = vst.msk [vmem:[#allocation4 + $0x4c] sm:$0xf] %vm934_vm9, %v1117_v48 }
 0x1cf   : > { %939 = vst.msk [vmem:[#allocation4 + $0x30] sm:$0xf] %vm934_vm9, %v919_v54  ;;  %1438 = vmatmul.bf16.gmra.mxu2 %v2278_v57 }
 0x1d2   : > { %v925_v11 = vpop.permute.xlu2 %924 }
 0x1d3   : > { %v1063_v58 = vpop.permute.xlu0 %1062 }
 0x1d4   : > { %1079 = vst.msk [vmem:[#allocation4 + $0x58] sm:$0xf] %vm877_vm8, %v1063_v58  ;;  %v811_v60 = vpop.permute.xlu1 %810 }
 0x1d5   : > { %1135 = vst.msk [vmem:[#allocation4 + $0x58] sm:$0xf] %vm934_vm9, %v1119_v59  ;;  %v2581_v12 = vld [vmem:[#allocation4 + $0x4c] sm:$0xf] }
 0x1d6   : > { %828 = vst.msk [vmem:[#allocation4 + $0x54] sm:$0xf] %vm820_vm7, %v811_v60  ;;  %v2285_v8 = vld [vmem:[#allocation4 + $0x30] sm:$0xf] }
 0x1da   : > { %v1405_v17 = vpop.f32.mrf.mxu1 }
 0x1db   : > { %v1000_v61 = vpop.permute.xlu0 %999  ;;  %v1406_v20 = vadd.f32 %v3216_v18, %v1405_v17 }
 0x1dc   : > { %1019 = vst.msk [vmem:[#allocation4 + $0x34] sm:$0xf] %vm820_vm7, %v1000_v61  ;;  %v923_v9 = vpop.permute.xlu1 %922  ;;  %v2299_v10 = vld [vmem:[#allocation4 + $0x54] sm:$0xf0] }
 0x1dd   : > { %1076 = vst.msk [vmem:[#allocation4 + $0x34] sm:$0xf] %vm877_vm8, %v3098_v42  ;;  %v2302_v13 = vor.u32 %v2581_v12, %v2299_v10 }
 0x1de   : > { %1132 = vst.msk [vmem:[#allocation4 + $0x34] sm:$0xf] %vm934_vm9, %v3137_v7 }
 0x1df   : > { %v1468_v44 = vpop.f32.mrf.mxu3 }
 0x1e2   : > { %v1407_v21 = vpop.f32.mrf.mxu1 }
 0x1e3   : > { %v864_v62 = vpop.permute.xlu0 %863  ;;  %v1408_v6 = vadd.f32 %v3216_v18, %v1407_v21 }
 0x1e4   : > { %883 = vst.msk [vmem:[#allocation4 + $0x3c] sm:$0xf] %vm877_vm8, %v864_v62 }
 0x1e5   : > { %940 = vst.msk [vmem:[#allocation4 + $0x3c] sm:$0xf] %vm934_vm9, %v921_v49  ;;  %v2578_v63 = vld [vmem:[#allocation4 + $0x34] sm:$0xf] }
 0x1e6   : > { %v2290_v1 = vor.u32 %v2578_v63, %v2287_v0  ;;  %v1573_v0 = vld [vmem:[#allocation6 + $0x1] sm:$0x1] }
 0x1e7   : > { %v1470_v53 = vpop.f32.mrf.mxu3 }
 0x1e8   : > { %1443 = vmatmul.bf16.gmra.mxu2 %v2290_v1 }
 0x1eb   : > { %v809_v5 = vpop.permute.xlu0 %808 }
 0x1ec   : > { %827 = vst.msk [vmem:[#allocation4 + $0x48] sm:$0xf] %vm820_vm7, %v809_v5  ;;  %v2579_v24 = vld [vmem:[#allocation4 + $0x38] sm:$0xf0] }
 0x1ed   : > { %884 = vst.msk [vmem:[#allocation4 + $0x48] sm:$0xf] %vm877_vm8, %v866_v3  ;;  %v2286_v42 = vor.u32 %v2579_v24, %v2285_v8 }
 0x1ee   : > { %941 = vst.msk [vmem:[#allocation4 + $0x48] sm:$0xf] %vm934_vm9, %v923_v9 }
 0x1ef   : > { %1414 = vmatmul.bf16.gmra.mxu1 %v2286_v42  ;;  %v1473_v58 = vpop.f32.mrf.mxu3 }
 0x1f3   : > { %v868_v7 = vpop.permute.xlu0 %867 }
 0x1f4   : > { %885 = vst.msk [vmem:[#allocation4 + $0x54] sm:$0xf] %vm877_vm8, %v868_v7 }
 0x1f5   : > { %942 = vst.msk [vmem:[#allocation4 + $0x54] sm:$0xf] %vm934_vm9, %v925_v11  ;;  %v2297_v14 = vld [vmem:[#allocation4 + $0x48] sm:$0xf] }
 0x1f7   : > { %v1475_v11 = vpop.f32.mrf.mxu3 }
 0x1f8   : > { %1448 = vmatmul.bf16.gmra.mxu2 %v2302_v13 }
 0x1fc   : > { %v2582_v15 = vld [vmem:[#allocation4 + $0x50] sm:$0xf0] }
 0x1fd   : > { %v2298_v16 = vor.u32 %v2582_v15, %v2297_v14 }
 0x1ff   : > { %1419 = vmatmul.bf16.gmra.mxu1 %v2298_v16 }
 0x213   : > { %v1434_v19 = vpop.f32.mrf.mxu2 }
 0x214   : > { %v1435_v22 = vadd.f32 %v1434_v19, %v1406_v20 }
 0x216   : > { %v1464_v26 = vadd.f32 %v1463_v4, %v1435_v22 }
 0x218   : > { %v1483_v31 = vmax.f32 %v1464_v26, 0.0 }
 0x21b   : > { %v1436_v23 = vpop.f32.mrf.mxu2 }
 0x21c   : > { %v1437_v28 = vadd.f32 %v1436_v23, %v1408_v6  ;;  %v1410_v43 = vpop.f32.mrf.mxu1  ;;  %v1478_v6 = vpop.f32.mrf.mxu3 }
 0x21d   : > { %v1411_v46 = vadd.f32 %v3216_v18, %v1410_v43 }
 0x21e   : > { %v1466_v27 = vadd.f32 %v1465_v30, %v1437_v28 }
 0x220   : > { %v1484_v32 = vmax.f32 %v1466_v27, 0.0 }
 0x222   : > { %v1491_v33 = vmax.f32 %v1483_v31, %v1484_v32 }
 0x224   : > { %1495 = vst.msk [vmem:[#allocation5] sm:$0xff] %vm655_vm3, %v1491_v33  ;;  %v1412_v47 = vpop.f32.mrf.mxu1 }
 0x225   : > { %v1413_v49 = vadd.f32 %v3216_v18, %v1412_v47 }
 0x22b   : > { %v1499_v34 = vld [vmem:[#allocation5] ss:$2 sm:$0xf]  ;;  %v1507_v25 = vld [vmem:[#allocation5 + $0x1] ss:$2 sm:$0xf] }
 0x22c   : > { %v1514_v35 = vmax.f32 %v1499_v34, %v1507_v25 }
 0x22e   : > { %v1518_v37 = vpack.c.bf16 %v1514_v35, %v1514_v35  ;;  %v1480_v35 = vpop.f32.mrf.mxu3 }
 0x230   : > { %v1529_v38 = vrot.slane %v1518_v37, 3  ;;  %1546 = vst [vmem:[#allocation1] sm:$0xff] %v1518_v37  ;;  %v1526_v39 = vsel %vm3223_vm11, %v1518_v37, %v1525_v2  ;;  %v1614_v2 = vld [vmem:[#allocation6 + $0x2] sm:$0x1] }
 0x231   : > { %1527 = vst [vmem:[#allocation6] sm:$0x1] %v1526_v39 }
 0x232   : > { %v1533_v40 = vsel %vm1530_vm12, %v1518_v37, %v1529_v38 }
 0x233   : > { %v1534_v41 = vshrl.u32 %v1533_v40, 16 }
 0x235   : > { %1538 = vrot.lane.b32.xlu0 %v1534_v41, %s2758_s22 }
 0x237   : > { %v1548_v29 = vld [vmem:[#allocation1 + $0x1] ss:$4 sm:$0xff] }
 0x238   : > { %1558 = vst [vmem:[#allocation1] sm:$0xff] %v1518_v37 }
 0x23f   : > { %v3234_v3 = vld [vmem:[#allocation1 + $0x1] ss:$4 sm:$0xff] }
 0x252   : > { %v1439_v45 = vpop.f32.mrf.mxu2 }
 0x253   : > { %v1440_v48 = vadd.f32 %v1439_v45, %v1411_v46 }
 0x255   : > { %v1469_v51 = vadd.f32 %v1468_v44, %v1440_v48 }
 0x257   : > { %v1485_v55 = vmax.f32 %v1469_v51, 0.0 }
 0x25a   : > { %v1441_v50 = vpop.f32.mrf.mxu2 }
 0x25b   : > { %v1442_v52 = vadd.f32 %v1441_v50, %v1413_v49  ;;  %v1655_v50 = vld [vmem:[#allocation6 + $0x3] sm:$0x1] }
 0x25d   : > { %v1471_v54 = vadd.f32 %v1470_v53, %v1442_v52 }
 0x25f   : > { %v1486_v56 = vmax.f32 %v1471_v54, 0.0 }
 0x261   : > { %v1492_v57 = vmax.f32 %v1485_v55, %v1486_v56  ;;  %v1561_v56 = vshrl.u32 %v3234_v3, 16  ;;  %v2609_v3 = vld [vmem:[%s3465_s5 + $0x38] sm:$0xff] }
 0x262   : > { %1964 = vmatpush.bf16.msra.mxu3 %v2609_v3 }
 0x263   : > { %1496 = vst.msk [vmem:[#allocation5 + $0x8] sm:$0xff] %vm655_vm3, %v1492_v57 }
 0x26a   : > { %v1501_v59 = vld [vmem:[#allocation5 + $0x8] ss:$2 sm:$0xf]  ;;  %v1509_v60 = vld [vmem:[#allocation5 + $0x9] ss:$2 sm:$0xf] }
 0x26b   : > { %v1444_v61 = vpop.f32.mrf.mxu2  ;;  %v1515_v62 = vmax.f32 %v1501_v59, %v1509_v60  ;;  %v1543_v60 = vld [vmem:[#allocation6] sm:$0x1] }
 0x26c   : > { %v1415_v63 = vpop.f32.mrf.mxu1  ;;  %v2627_v59 = vld [vmem:[%s3465_s5 + $0xc8] sm:$0xff] }
 0x26d   : > { %v1519_v1 = vpack.c.bf16 %v1515_v62, %v1515_v62  ;;  %v1416_v5 = vadd.f32 %v3216_v18, %v1415_v63 }
 0x26f   : > { %v1577_v8 = vrot.slane %v1519_v1, 3  ;;  %1591 = vst [vmem:[#allocation1] sm:$0xff] %v1519_v1  ;;  %v1574_v24 = vsel %vm3223_vm11, %v1519_v1, %v1573_v0  ;;  %v1445_v7 = vadd.f32 %v1444_v61, %v1416_v5  ;;  %v2608_v5 = vld [vmem:[%s3465_s5 + $0x30] sm:$0xff] }
 0x270   : > { %1575 = vst [vmem:[#allocation6 + $0x1] sm:$0x1] %v1574_v24  ;;  %1965 = vmatpush.bf16.msra.mxu3 %v2608_v5  ;;  %v2607_v24 = vld [vmem:[%s3465_s5 + $0x28] sm:$0xff] }
 0x271   : > { %v1580_v9 = vsel %vm1530_vm12, %v1519_v1, %v1577_v8  ;;  %v1474_v15 = vadd.f32 %v1473_v58, %v1445_v7  ;;  %v2625_v8 = vld [vmem:[%s3465_s5 + $0xb8] sm:$0xff] }
 0x272   : > { %v1581_v42 = vshrl.u32 %v1580_v9, 16  ;;  %1990 = vmatpush.bf16.msra.mxu2 %v2625_v8 }
 0x273   : > { %v1446_v10 = vpop.f32.mrf.mxu2  ;;  %v1487_v4 = vmax.f32 %v1474_v15, 0.0 }
 0x274   : > { %v1417_v12 = vpop.f32.mrf.mxu1  ;;  %1585 = vrot.lane.b32.xlu1 %v1581_v42, %s2758_s22  ;;  %1966 = vmatpush.bf16.msra.mxu3 %v2607_v24  ;;  %v2641_v24 = vld [vmem:[%s3467_s7 + $0x38] sm:$0xff] }
 0x275   : > { %v1418_v13 = vadd.f32 %v3216_v18, %v1417_v12  ;;  %v2606_v12 = vld [vmem:[%s3465_s5 + $0x20] sm:$0xff] }
 0x276   : > { %v1593_v14 = vld [vmem:[#allocation1 + $0x1] ss:$4 sm:$0xff] }
 0x277   : > { %v1447_v16 = vadd.f32 %v1446_v10, %v1418_v13  ;;  %1601 = vst [vmem:[#allocation1] sm:$0xff] %v1519_v1  ;;  %v1588_v42 = vld [vmem:[#allocation6 + $0x1] sm:$0x1]  ;;  %v2617_v10 = vld [vmem:[%s3465_s5 + $0x78] sm:$0xff]  ;;  %v2616_v13 = vld [vmem:[%s3465_s5 + $0x70] sm:$0xff] }
 0x278   : > { %1977 = vmatpush.bf16.msrb.mxu1 %v2617_v10  ;;  %1967 = vmatpush.bf16.msra.mxu3 %v2606_v12  ;;  %v2640_v12 = vld [vmem:[%s3467_s7 + $0x30] sm:$0xff] }
 0x279   : > { %v1476_v17 = vadd.f32 %v1475_v11, %v1447_v16  ;;  %v2624_v11 = vld [vmem:[%s3465_s5 + $0xb0] sm:$0xff] }
 0x27a   : > { %1991 = vmatpush.bf16.msra.mxu2 %v2624_v11 }
 0x27b   : > { %v1488_v19 = vmax.f32 %v1476_v17, 0.0  ;;  %v1449_v20 = vpop.f32.mrf.mxu2  ;;  %v2635_v17 = vld [vmem:[%s3467_s7 + $0x8] sm:$0xff] }
 0x27c   : > { %v1420_v21 = vpop.f32.mrf.mxu1  ;;  %1550 = vrot.lane.b32.xlu1 %v1548_v29, %s2759_s23  ;;  %1978 = vmatpush.bf16.msrb.mxu1 %v2616_v13  ;;  %v2639_v13 = vld [vmem:[%s3467_s7 + $0x28] sm:$0xff] }
 0x27d   : > { %v1493_v22 = vmax.f32 %v1487_v4, %v1488_v19  ;;  %v1421_v23 = vadd.f32 %v3216_v18, %v1420_v21 }
 0x27e   : > { %v1603_v39 = vld [vmem:[#allocation1 + $0x1] ss:$4 sm:$0xff] }
 0x27f   : > { %1497 = vst.msk [vmem:[#allocation5 + $0x10] sm:$0xff] %vm655_vm3, %v1493_v22  ;;  %v1450_v26 = vadd.f32 %v1449_v20, %v1421_v23  ;;  %v1604_v1 = vshrl.u32 %v1603_v39, 16  ;;  %v2623_v23 = vld [vmem:[%s3465_s5 + $0xa8] sm:$0xff]  ;;  %v2633_v39 = vld [vmem:[%s3465_s5 + $0xf8] sm:$0xff] }
 0x280   : > { %1992 = vmatpush.bf16.msra.mxu2 %v2623_v23 }
 0x281   : > { %v1479_v33 = vadd.f32 %v1478_v6, %v1450_v26 }
 0x283   : > { %v1451_v27 = vpop.f32.mrf.mxu2  ;;  %v1489_v40 = vmax.f32 %v1479_v33, 0.0  ;;  %v2615_v33 = vld [vmem:[%s3465_s5 + $0x68] sm:$0xff] }
 0x284   : > { %v1422_v28 = vpop.f32.mrf.mxu1  ;;  %1979 = vmatpush.bf16.msrb.mxu1 %v2615_v33 }
 0x285   : > { %v1423_v30 = vadd.f32 %v3216_v18, %v1422_v28 }
 0x286   : > { %v1503_v31 = vld [vmem:[#allocation5 + $0x10] ss:$2 sm:$0xf]  ;;  %v1511_v32 = vld [vmem:[#allocation5 + $0x11] ss:$2 sm:$0xf] }
 0x287   : > { %v1452_v34 = vadd.f32 %v1451_v27, %v1423_v30  ;;  %v1516_v25 = vmax.f32 %v1503_v31, %v1511_v32  ;;  %v2605_v31 = vld [vmem:[%s3465_s5 + $0x18] sm:$0xff]  ;;  %v2604_v32 = vld [vmem:[%s3465_s5 + $0x10] sm:$0xff] }
 0x288   : > { %1968 = vmatpush.bf16.msra.mxu3 %v2605_v31 }
 0x289   : > { %v1481_v37 = vadd.f32 %v1480_v35, %v1452_v34  ;;  %v1520_v38 = vpack.c.bf16 %v1516_v25, %v1516_v25  ;;  %v2603_v34 = vld [vmem:[%s3465_s5 + $0x8] sm:$0xff]  ;;  %v2622_v25 = vld [vmem:[%s3465_s5 + $0xa0] sm:$0xff] }
 0x28a   : > { %v2614_v35 = vld [vmem:[%s3465_s5 + $0x60] sm:$0xff]  ;;  %1993 = vmatpush.bf16.msra.mxu2 %v2622_v25 }
 0x28b   : > { %v1490_v41 = vmax.f32 %v1481_v37, 0.0  ;;  %v1618_v29 = vrot.slane %v1520_v38, 3  ;;  %1632 = vst [vmem:[#allocation1] sm:$0xff] %v1520_v38  ;;  %v1615_v43 = vsel %vm3223_vm11, %v1520_v38, %v1614_v2  ;;  %1980 = vmatpush.bf16.msrb.mxu1 %v2614_v35  ;;  %v2602_v2 = vld [vmem:[%s3465_s5] sm:$0xff]  ;;  %v2621_v37 = vld [vmem:[%s3465_s5 + $0x98] sm:$0xff] }
 0x28c   : > { %1616 = vst [vmem:[#allocation6 + $0x2] sm:$0x1] %v1615_v43  ;;  %1969 = vmatpush.bf16.msra.mxu3 %v2604_v32  ;;  %v2611_v43 = vld [vmem:[%s3465_s5 + $0x48] sm:$0xff]  ;;  %v2034_v35 = vld [vmem:[%s3468_s8] sm:$0x1] }
 0x28d   : > { %v1494_v18 = vmax.f32 %v1489_v40, %v1490_v41  ;;  %v1621_v44 = vsel %vm1530_vm12, %v1520_v38, %v1618_v29  ;;  %v2612_v40 = vld [vmem:[%s3465_s5 + $0x50] sm:$0xff] }
 0x28e   : > { %v1622_v45 = vshrl.u32 %v1621_v44, 16  ;;  %1994 = vmatpush.bf16.msra.mxu2 %v2621_v37  ;;  %v2620_v41 = vld [vmem:[%s3465_s5 + $0x90] sm:$0xff]  ;;  %v2631_v44 = vld [vmem:[%s3465_s5 + $0xe8] sm:$0xff] }
 0x28f   : > { %1498 = vst.msk [vmem:[#allocation5 + $0x18] sm:$0xff] %vm655_vm3, %v1494_v18  ;;  %v2632_v29 = vld [vmem:[%s3465_s5 + $0xf0] sm:$0xff]  ;;  %v2619_v18 = vld [vmem:[%s3465_s5 + $0x88] sm:$0xff] }
 0x290   : > { %1626 = vrot.lane.b32.xlu2 %v1622_v45, %s2758_s22  ;;  %1970 = vmatpush.bf16.msra.mxu3 %v2603_v34 }
 0x292   : > { %v1634_v46 = vld [vmem:[#allocation1 + $0x1] ss:$4 sm:$0xff]  ;;  %1995 = vmatpush.bf16.msra.mxu2 %v2620_v41 }
 0x293   : > { %1642 = vst [vmem:[#allocation1] sm:$0xff] %v1520_v38  ;;  %v1629_v15 = vld [vmem:[#allocation6 + $0x2] sm:$0x1]  ;;  %v2613_v38 = vld [vmem:[%s3465_s5 + $0x58] sm:$0xff] }
 0x294   : > { %1971 = vmatpush.bf16.msra.mxu3 %v2602_v2  ;;  %1981 = vmatpush.bf16.msrb.mxu1 %v2613_v38 }
 0x296   : > { %v1505_v47 = vld [vmem:[#allocation5 + $0x18] ss:$2 sm:$0xf]  ;;  %v1513_v48 = vld [vmem:[#allocation5 + $0x19] ss:$2 sm:$0xf]  ;;  %1996 = vmatpush.bf16.msra.mxu2 %v2619_v18 }
 0x297   : > { %v1517_v49 = vmax.f32 %v1505_v47, %v1513_v48  ;;  %v2610_v47 = vld [vmem:[%s3465_s5 + $0x40] sm:$0xff] }
 0x298   : > { %1595 = vrot.lane.b32.xlu2 %v1593_v14, %s2759_s23  ;;  %2003 = vmatpush.bf16.msrb.mxu3 %v2633_v39  ;;  %v2618_v48 = vld [vmem:[%s3465_s5 + $0x80] sm:$0xff] }
 0x299   : > { %v1521_v51 = vpack.c.bf16 %v1517_v49, %v1517_v49  ;;  %1982 = vmatpush.bf16.msrb.mxu1 %v2612_v40 }
 0x29a   : > { %v1644_v52 = vld [vmem:[#allocation1 + $0x1] ss:$4 sm:$0xff]  ;;  %1997 = vmatpush.bf16.msra.mxu2 %v2618_v48 }
 0x29b   : > { %v1659_v53 = vrot.slane %v1521_v51, 3  ;;  %1673 = vst [vmem:[#allocation1] sm:$0xff] %v1521_v51  ;;  %v1656_v54 = vsel %vm3223_vm11, %v1521_v51, %v1655_v50  ;;  %v1645_v62 = vshrl.u32 %v1644_v52, 16  ;;  %v2630_v50 = vld [vmem:[%s3465_s5 + $0xe0] sm:$0xff] }
 0x29c   : > { %1657 = vst [vmem:[#allocation6 + $0x3] sm:$0x1] %v1656_v54  ;;  %2004 = vmatpush.bf16.msrb.mxu3 %v2632_v29 }
 0x29d   : > { %v1662_v55 = vsel %vm1530_vm12, %v1521_v51, %v1659_v53  ;;  %1983 = vmatpush.bf16.msrb.mxu1 %v2611_v43 }
 0x29e   : > { %v1663_v57 = vshrl.u32 %v1662_v55, 16 }
 0x2a0   : > { %1565 = vrot.lane.b32.xlu2 %v1561_v56, %s2760_s24  ;;  %1667 = vrot.lane.b32.xlu0 %v1663_v57, %s2758_s22  ;;  %v2628_v57 = vld [vmem:[%s3465_s5 + $0xd0] sm:$0xff]  ;;  %s2712_s22 = scalar_lea.hbm %s3469_s9, 2 }
 0x2a1   : > { %2005 = vmatpush.bf16.msrb.mxu3 %v2631_v44  ;;  %1984 = vmatpush.bf16.msrb.mxu1 %v2610_v47 }
 0x2a2   : > { %v1675_v58 = vld [vmem:[#allocation1 + $0x1] ss:$4 sm:$0xff] }
 0x2a3   : > { %1677 = vrot.lane.b32.xlu1 %v1675_v58, %s2759_s23  ;;  %1683 = vst [vmem:[#allocation1] sm:$0xff] %v1521_v51  ;;  %v1670_v45 = vld [vmem:[#allocation6 + $0x3] sm:$0x1]  ;;  %v2629_v51 = vld [vmem:[%s3465_s5 + $0xd8] sm:$0xff] }
 0x2a5   : > { %2006 = vmatpush.bf16.msrb.mxu3 %v2630_v50  ;;  %2083 = vmatpush.bf16.msra.mxu1 %v2641_v24 }
 0x2a7   : > { %v1539_v36 = vpop.permute.xlu0 %1538 }
 0x2a8   : > { %v1544_v61 = vsel %vm3260_vm14, %v1539_v36, %v1543_v60  ;;  %1636 = vrot.lane.b32.xlu0 %v1634_v46, %s2759_s23  ;;  %s324_s23 = scalar_lea.vmem [#allocation7], %s323_s25 }
 0x2a9   : > { %1545 = vst [vmem:[#allocation6] sm:$0x1] %v1544_v61  ;;  %2007 = vmatpush.bf16.msrb.mxu3 %v2629_v51  ;;  %2084 = vmatpush.bf16.msra.mxu1 %v2640_v12  ;;  %s2108_s14 = sshll.u32 %s324_s23, 4  ;;  %s2109_s14 = int_to_ptr.vmem [resolvable:$true] %s2108_s14 }
 0x2aa   : > { %v1685_v63 = vld [vmem:[#allocation1 + $0x1] ss:$4 sm:$0xff] }
 0x2ab   : > { %1649 = vrot.lane.b32.xlu1 %v1645_v62, %s2760_s24  ;;  %v1686_v0 = vshrl.u32 %v1685_v63, 16 }
 0x2ad   : > { %1690 = vrot.lane.b32.xlu2 %v1686_v0, %s2760_s24  ;;  %2008 = vmatpush.bf16.msrb.mxu3 %v2628_v57  ;;  %v2626_v0 = vld [vmem:[%s3465_s5 + $0xc0] sm:$0xff] }
 0x2ae   : > { %2085 = vmatpush.bf16.msra.mxu1 %v2639_v13 }
 0x2b0   : > { %1608 = vrot.lane.b32.xlu0 %v1604_v1, %s2760_s24  ;;  %v1555_v19 = vld [vmem:[#allocation6] sm:$0x1]  ;;  %s2706_s24 = sshra.s32 %s2111_s16, 4  ;;  %s2707_s24 = int_to_ptr.hbm [resolvable:$true] %s2706_s24 }
 0x2b1   : > { %2009 = vmatpush.bf16.msrb.mxu3 %v2627_v59  ;;  %s2708_s21 = scalar_lea.hbm %s2707_s24, 1  ;;  %p2713_p0 = scmp.lt.s32.totalorder %s2707_s24, %s3469_s9 }
 0x2b2   : > { %p2709_p11 = scmp.ne.s32.totalorder %s2707_s24, %s2708_s21  ;;  %p2714_p1 = scmp.lt.s32.totalorder %s2712_s22, %s2708_s21 }
 0x2b4   : > { %p2710_p12 = pnand %p2709_p11, %p2849_p5  ;;  %p2715_p2 = por %p2714_p1, %p2713_p0 }
 0x2b5   : > { %2010 = vmatpush.bf16.msrb.mxu3 %v2626_v0 }
 0x2b6   : > { %p2711_p13 = pneg %p2710_p12 }
 0x2b8   : > { %p2716_p3 = pnand %p2715_p2, %p2711_p13 }
 0x2e6   : > { %v1586_v9 = vpop.permute.xlu1 %1585 }
 0x2e7   : > { %v1589_v7 = vsel %vm3260_vm14, %v1586_v9, %v1588_v42 }
 0x2e8   : > { %1590 = vst [vmem:[#allocation6 + $0x1] sm:$0x1] %v1589_v7 }
 0x2ea   : > { %v1627_v14 = vpop.permute.xlu2 %1626 }
 0x2eb   : > { %v1630_v16 = vsel %vm3260_vm14, %v1627_v14, %v1629_v15  ;;  %v2638_v14 = vld [vmem:[%s3467_s7 + $0x20] sm:$0xff]  ;;  %v2637_v15 = vld [vmem:[%s3467_s7 + $0x18] sm:$0xff] }
 0x2ec   : > { %1631 = vst [vmem:[#allocation6 + $0x2] sm:$0x1] %v1630_v16  ;;  %2086 = vmatpush.bf16.msra.mxu1 %v2638_v14  ;;  %v2636_v16 = vld [vmem:[%s3467_s7 + $0x10] sm:$0xff] }
 0x2ee   : > { %v1551_v4 = vpop.permute.xlu1 %1550 }
 0x2ef   : > { %v1556_v20 = vsel %vm3299_vm0, %v1551_v4, %v1555_v19  ;;  %v1598_v21 = vld [vmem:[#allocation6 + $0x1] sm:$0x1]  ;;  %v2634_v4 = vld [vmem:[%s3467_s7] sm:$0xff] }
 0x2f0   : > { %1557 = vst [vmem:[#allocation6] sm:$0x1] %v1556_v20  ;;  %2087 = vmatpush.bf16.msra.mxu1 %v2637_v15 }
 0x2f2   : > { %v1596_v22 = vpop.permute.xlu2 %1595 }
 0x2f3   : > { %v1599_v6 = vsel %vm3299_vm0, %v1596_v22, %v1598_v21  ;;  %v1639_v53 = vld [vmem:[#allocation6 + $0x2] sm:$0x1] }
 0x2f4   : > { %1600 = vst [vmem:[#allocation6 + $0x1] sm:$0x1] %v1599_v6  ;;  %2088 = vmatpush.bf16.msra.mxu1 %v2636_v16  ;;  %v1761_v6 = vld [vmem:[%s3466_s6] sm:$0x1] }
 0x2f7   : > { %v1570_v30 = vld [vmem:[#allocation6] sm:$0x1] }
 0x2f8   : > { %2089 = vmatpush.bf16.msra.mxu1 %v2635_v17 }
 0x2fa   : > { %v1566_v28 = vpop.permute.xlu2 %1565 }
 0x2fb   : > { %v1571_v27 = vsel %vm3311_vm2, %v1566_v28, %v1570_v30  ;;  %v1611_v36 = vld [vmem:[#allocation6 + $0x1] sm:$0x1] }
 0x2fc   : > { %1572 = vst [vmem:[#allocation6] sm:$0x1] %v1571_v27  ;;  %2090 = vmatpush.bf16.msra.mxu1 %v2634_v4 }
 0x307   : > { %v1691_v1 = vpop.permute.xlu2 %1690 }
 0x312   : > { %v1668_v46 = vpop.permute.xlu0 %1667 }
 0x313   : > { %v1671_v49 = vsel %vm3260_vm14, %v1668_v46, %v1670_v45 }
 0x314   : > { %1672 = vst [vmem:[#allocation6 + $0x3] sm:$0x1] %v1671_v49 }
 0x315   : > { %v1678_v52 = vpop.permute.xlu1 %1677 }
 0x31a   : > { %v1637_v54 = vpop.permute.xlu0 %1636 }
 0x31b   : > { %v1680_v55 = vld [vmem:[#allocation6 + $0x3] sm:$0x1]  ;;  %v1640_v56 = vsel %vm3299_vm0, %v1637_v54, %v1639_v53 }
 0x31c   : > { %v1681_v58 = vsel %vm3299_vm0, %v1678_v52, %v1680_v55  ;;  %1641 = vst [vmem:[#allocation6 + $0x2] sm:$0x1] %v1640_v56 }
 0x31d   : > { %1682 = vst [vmem:[#allocation6 + $0x3] sm:$0x1] %v1681_v58  ;;  %v1650_v61 = vpop.permute.xlu1 %1649 }
 0x322   : > { %v1609_v60 = vpop.permute.xlu0 %1608 }
 0x323   : > { %v1652_v62 = vld [vmem:[#allocation6 + $0x2] sm:$0x1]  ;;  %v1612_v63 = vsel %vm3311_vm2, %v1609_v60, %v1611_v36 }
 0x324   : > { %v1693_v3 = vld [vmem:[#allocation6 + $0x3] sm:$0x1]  ;;  %v1653_v5 = vsel %vm3311_vm2, %v1650_v61, %v1652_v62  ;;  %1613 = vst [vmem:[#allocation6 + $0x1] sm:$0x1] %v1612_v63 }
 0x325   : > { %v1694_v8 = vsel %vm3311_vm2, %v1691_v1, %v1693_v3  ;;  %1654 = vst [vmem:[#allocation6 + $0x2] sm:$0x1] %v1653_v5 }
 0x326   : > { %1695 = vst [vmem:[#allocation6 + $0x3] sm:$0x1] %v1694_v8 }
 0x32d   : > { %v1696_v9 = vld [vmem:[#allocation6] sm:$0xf] }
 0x32e   : > { %1763 = vst [vmem:[#allocation1] ss:$9 sm:$0xff] %v1696_v9 }
 0x335   : > { %v1764_v42 = vld [vmem:[#allocation1] sm:$0xff]  ;;  %v1765_v7 = vld [vmem:[#allocation1 + $0x9] sm:$0xff]  ;;  %v1766_v10 = vld [vmem:[#allocation1 + $0x12] sm:$0xff] }
 0x336   : > { %1972 = vmatmul.bf16.vlgmr.msra.gmra.mxu3 %v1764_v42  ;;  %1985 = vmatmul.bf16.vlgmr.msrb.gmra.mxu1 %v1765_v7  ;;  %v1767_v11 = vld [vmem:[#allocation1 + $0x1b] sm:$0xff] }
 0x337   : > { %1998 = vmatmul.bf16.vlgmr.msra.gmra.mxu2 %v1766_v10 }
 0x346   : > { %2011 = vmatmul.bf16.vlgmr.msrb.gmra.mxu3 %v1767_v11 }
 0x3b3   : > { %v1986_v19 = vpop.f32.mrf.mxu1 }
 0x3b9   : > { %v1973_v20 = vpop.f32.mrf.mxu3 }
 0x3ba   : > { %v1999_v21 = vpop.f32.mrf.mxu2  ;;  %v1974_v23 = vadd.f32 %v1973_v20, %v1761_v6 }
 0x3bb   : > { %v1988_v22 = vpop.f32.mrf.mxu1 }
 0x3bc   : > { %v1987_v30 = vadd.f32 %v1986_v19, %v1974_v23 }
 0x3be   : > { %v2000_v27 = vadd.f32 %v1999_v21, %v1987_v30 }
 0x3c1   : > { %v1975_v26 = vpop.f32.mrf.mxu3 }
 0x3c2   : > { %v2001_v28 = vpop.f32.mrf.mxu2 }
 0x3c9   : > { %v2012_v31 = vpop.f32.mrf.mxu3 }
 0x3ca   : > { %v2013_v32 = vadd.f32 %v2012_v31, %v2000_v27 }
 0x3cc   : > { %v2016_v33 = vmax.f32 %v2013_v32, 0.0 }
 0x3ce   : > { %v2017_v34 = vpack.c.bf16 %v2016_v33, %v2016_v33 }
 0x3d0   : > { %2091 = vmatmul.bf16.vlgmr.msra.gmra.mxu1 %v2017_v34 }
 0x3d1   : > { %v2014_v25 = vpop.f32.mrf.mxu3 }
 0x44d   : > { %v2092_v2 = vpop.f32.mrf.mxu1 }
 0x44e   : > { %v2093_v37 = vadd.f32 %v2092_v2, %v2034_v35 }
 0x450   : > { %2096 = vst [vmem:[%s324_s23] sm:$0x1] %v2093_v37 }
 0x451   : > { %2719 = shalt.err (!%p2716_p3)
}
 0x452   : > { %2646 = dma.vmem_to_hbm [thread:$0]  (%p2849_p5), %s2109_s14, 16, %s2111_s16, %s2098_s17  }
 0x455   : > { %v2094_v38 = vpop.f32.mrf.mxu1 }
 0x456 PF: > { %p2652_p4 = scmp.ge.s32.totalorder %s2754_s12, 2  ;;  %s2122_s25 = sand.u32 1, %s2742_s30  }
 0x457   : > { %s2123_s27 = scalar_lea.sflag [#allocation8], %s2122_s25 }
 0x458   : > { %p2649_p7 = pnand %p2652_p4, %p2853_p6 }
 0x45a   : > { %p2650_p8 = pneg %p2649_p7 }
 0x45c   : > { %2737 = dma.done.wait (%p2650_p8), %s2123_s27, 16  }
 0x45d   : > { %2739 = vsyncadd (%p2650_p8), %s2123_s27, 4294967280  ;;  %p19_p9 = scmp.ge.s32.totalorder %s2836_s15, 4   ;;  %s3480_s30 = smov %s2746_s10 }
 0x45e   : > { %s3481_s10 = smov %s2750_s11  ;;  %s3482_s11 = smov %s2847_s18 }
 0x45f   : > { %s3483_s12 = smov %s2836_s15  ;;  %21 = sbr.rel (!%p19_p9) target bundleno = 3 (0x3), region = 124 }
 0x464   :  { %2128 = vsyncpa [#allocation8], 1 }
 0x465   :  { %2130 = vsyncpa [#allocation8 + $0x1], 1 }

</bundles_post_ra>
